<compile_context>
chip_gen: v5e
topology: v5e:2x2
jax: 0.10.0
libtpu: 0.0.40
codegen_flags: <defaults>
</compile_context>

<pallas_src>
import functools
import math

import jax
import jax.numpy as jnp
from jax.experimental import pallas as pl
from jax.experimental.pallas import tpu as pltpu

SHIFT = math.log(2.0)  # ShiftedSoftplus intercept


def _round_up(x, m):
    return ((x + m - 1) // m) * m


# --------------------------------------------------------------------------
# Kernel 1: per-node MLP + CSR segment-sum partials.
# grid = (num_splits [parallel], tiles_per_split [arbitrary])
# --------------------------------------------------------------------------
def node_partial_kernel(ptr_ref, gstart_ref, gend_ref,        # SMEM (scalar prefetch)
                        ht_ref, w1_ref, b1_ref,                # VMEM inputs
                        part_ref,                              # VMEM out block [D1, G]
                        *, compute_dtype):
    split = pl.program_id(0)
    step = pl.program_id(1)
    tiles_per_split = pl.num_programs(1)

    # Init the per-split partial accumulator (output block is resident across
    # the reduction axis).
    @pl.when(step == 0)
    def _():
        part_ref[...] = jnp.zeros_like(part_ref)

    cd = compute_dtype
    # lin1 in transposed orientation: [D1, C] @ [C, TN] -> [D1, TN], f32 acc.
    h1 = jnp.dot(w1_ref[...].astype(cd), ht_ref[...].astype(cd),
                 preferred_element_type=jnp.float32)
    h1 = h1 + b1_ref[...]                                       # bias column broadcast
    # ShiftedSoftplus (EUP): bf16 input on the bf16 path, f32 afterwards.
    act = jax.nn.softplus(h1.astype(cd)).astype(jnp.float32) - SHIFT   # [D1, TN]

    tile_n = ht_ref.shape[1]
    num_graphs = part_ref.shape[1]

    tile_idx = split * tiles_per_split + step
    node0 = tile_idx * tile_n
    node_idx = node0 + jax.lax.broadcasted_iota(jnp.int32, (1, tile_n), 1)   # [1, TN]
    g_iota = jax.lax.broadcasted_iota(jnp.int32, (1, num_graphs), 1)         # [1, G]

    g_lo = gstart_ref[tile_idx]
    g_hi = gend_ref[tile_idx]

    # CSR reduction: loop only over the graphs present in this tile (batch is
    # sorted, so they form a contiguous range).  Padded nodes lie outside
    # [ptr[g], ptr[g+1]) for every g, so they contribute nothing.
    def accumulate(g, carry):
        lo = ptr_ref[g]
        hi = ptr_ref[g + 1]
        in_seg = (node_idx >= lo) & (node_idx < hi)                           # [1, TN]
        red = jnp.sum(jnp.where(in_seg, act, 0.0), axis=1, keepdims=True)     # [D1, 1]
        part_ref[...] += jnp.where(g_iota == g, red, 0.0)                     # [D1, G]
        return carry

    jax.lax.fori_loop(g_lo, g_hi + 1, accumulate, 0)


# --------------------------------------------------------------------------
# Kernel 2: tiny epilogue — sum partials, lin2 + ShiftedSoftplus, lin3.
# --------------------------------------------------------------------------
def graph_mlp_kernel(part_ref, w2_ref, b2_ref, w3_ref, b3_ref, out_ref,
                     *, compute_dtype):
    cd = compute_dtype
    seg = jnp.sum(part_ref[...], axis=0)                                      # [D1, G] f32
    h2 = jnp.dot(w2_ref[...].astype(cd), seg.astype(cd),
                 preferred_element_type=jnp.float32) + b2_ref[...]            # [D2, G]
    h2 = jax.nn.softplus(h2.astype(cd)).astype(jnp.float32) - SHIFT
    out = jnp.dot(w3_ref[...].astype(cd), h2.astype(cd),
                  preferred_element_type=jnp.float32) + b3_ref[...]           # [out, G]
    out_ref[...] = out.astype(out_ref.dtype)


# --------------------------------------------------------------------------
# Host-side setup / wrapper.
# --------------------------------------------------------------------------
def prepare_params(torch_style_params):
    """PyTorch Linear params [out, in] / [out] -> kernel-ready (no transpose needed:
    the kernels run in the transposed / weight-untransposed orientation)."""
    w1, b1, w2, b2, w3, b3 = torch_style_params
    return (jnp.asarray(w1), jnp.asarray(b1).reshape(-1, 1),
            jnp.asarray(w2), jnp.asarray(b2).reshape(-1, 1),
            jnp.asarray(w3), jnp.asarray(b3).reshape(-1, 1))


def _vmem_bytes_estimate(tile_n, c, d1, num_graphs):
    """VMEM estimate including (8,128) layout padding."""
    f32 = 4
    pad8 = lambda v: _round_up(v, 8)
    pad128 = lambda v: _round_up(v, 128)
    weights = pad8(d1) * pad128(c) * f32 + pad8(d1) * 128 * f32     # resident w1 + b1
    streamed = 2 * pad8(c) * tile_n * f32                           # double-buffered hT
    inter = 4 * pad8(d1) * tile_n * f32                             # h1 / act / select temps
    out_blk = pad8(d1) * pad128(num_graphs) * f32                   # partial-sum block
    return weights + streamed + inter + out_blk


def readout_forward(h, batch, params, num_graphs, *, tile_n=4096, num_splits=2,
                    compute_dtype=jnp.bfloat16):
    """h: [N, C] f32; batch: [N] int graph ids, sorted (CSR, as segment_csr requires)."""
    n_nodes, c = h.shape
    w1, b1, w2, b2, w3, b3 = params
    d1 = w1.shape[0]
    out_size = w3.shape[0]

    num_splits = max(1, int(num_splits))
    tile_n = int(tile_n) if tile_n else 4096
    tile_n = min(tile_n, _round_up(pl.cdiv(n_nodes, num_splits), 128))
    tile_n = max(128, _round_up(tile_n, 128))
    n_pad = _round_up(n_nodes, tile_n * num_splits)
    num_tiles = n_pad // tile_n
    tiles_per_split = num_tiles // num_splits

    # Lane-dense feature layout: one producer-side transpose to [C, N].
    ht = jnp.transpose(jnp.asarray(h, jnp.float32))                 # [C, N]
    if n_pad != n_nodes:
        ht = jnp.pad(ht, ((0, 0), (0, n_pad - n_nodes)))

    # CSR pointer + per-tile (inclusive) graph ranges, prefetched to SMEM.
    batch = jnp.asarray(batch, jnp.int32)
    ptr = jnp.searchsorted(
        batch, jnp.arange(num_graphs + 1, dtype=jnp.int32)).astype(jnp.int32)
    batch_ext = jnp.concatenate(
        [jnp.clip(batch, 0, num_graphs - 1),
         jnp.full((n_pad - n_nodes,), num_graphs - 1, jnp.int32)])
    tile_starts = jnp.arange(num_tiles, dtype=jnp.int32) * tile_n
    g_start = batch_ext[tile_starts]
    g_end = batch_ext[tile_starts + (tile_n - 1)]

    est = _vmem_bytes_estimate(tile_n, c, d1, num_graphs)
    # Cap well below v7x's 64 MiB physical VMEM per TensorCore (review item 6).
    vmem_limit = int(min(max(est + (8 << 20), 32 << 20), 48 << 20))

    partials = pl.pallas_call(
        functools.partial(node_partial_kernel, compute_dtype=compute_dtype),
        out_shape=jax.ShapeDtypeStruct((num_splits, d1, num_graphs), jnp.float32),
        grid_spec=pltpu.PrefetchScalarGridSpec(
            num_scalar_prefetch=3,
            grid=(num_splits, tiles_per_split),
            in_specs=[
                pl.BlockSpec((c, tile_n),
                             lambda s, t, p0, p1, p2: (0, s * tiles_per_split + t)),
                pl.BlockSpec((d1, c), lambda s, t, p0, p1, p2: (0, 0)),   # w1 resident
                pl.BlockSpec((d1, 1), lambda s, t, p0, p1, p2: (0, 0)),   # b1 resident
            ],
            out_specs=pl.BlockSpec((None, d1, num_graphs),
                                   lambda s, t, p0, p1, p2: (s, 0, 0)),
        ),
        compiler_params=pltpu.CompilerParams(
            dimension_semantics=("parallel", "arbitrary"),
            vmem_limit_bytes=vmem_limit,
        ),
    )(ptr, g_start, g_end, ht, w1, b1)

    # Tiny epilogue: sum the per-split partials, lin2 + SSP, lin3.
    out_t = pl.pallas_call(
        functools.partial(graph_mlp_kernel, compute_dtype=compute_dtype),
        out_shape=jax.ShapeDtypeStruct((out_size, num_graphs), jnp.float32),
    )(partials, w2, b2, w3, b3)
    return out_t.T                                               # [G, out_size]


# --------------------------------------------------------------------------
# Reference, synthetic params, and test.
# --------------------------------------------------------------------------
def _init_params(key, channels, out_size):
    """Deterministic synthetic params with PyTorch Linear shapes [out, in]."""
    ks = jax.random.split(key, 6)

    def lin(kw, kb, fan_in, fan_out):
        bound = 1.0 / math.sqrt(fan_in)
        w = jax.random.uniform(kw, (fan_out, fan_in), jnp.float32, -bound, bound)
        b = jax.random.uniform(kb, (fan_out,), jnp.float32, -bound, bound)
        return w, b

    w1, b1 = lin(ks[0], ks[1], channels, channels * 10)
    w2, b2 = lin(ks[2], ks[3], channels * 10, channels * 5)
    w3, b3 = lin(ks[4], ks[5], channels * 5, out_size)
    return (w1, b1, w2, b2, w3, b3)


def _reference(h, batch, torch_params, num_graphs):
    w1, b1, w2, b2, w3, b3 = torch_params
    x = jax.nn.softplus(h @ w1.T + b1) - SHIFT
    x = jax.ops.segment_sum(x, batch, num_segments=num_graphs)
    x = jax.nn.softplus(x @ w2.T + b2) - SHIFT
    return x @ w3.T + b3


if __name__ == "__main__":
    channels = 32
    out_size = 1
    num_graphs = 4
    nodes_per_graph = 96
    n_nodes = num_graphs * nodes_per_graph   # 384 nodes

    key = jax.random.PRNGKey(0)
    k_h, k_p = jax.random.split(key)
    h = jax.random.normal(k_h, (n_nodes, channels), jnp.float32)
    batch = jnp.repeat(jnp.arange(num_graphs, dtype=jnp.int32), nodes_per_graph)

    torch_params = _init_params(k_p, channels, out_size)
    params = prepare_params(torch_params)     # one-time reshape (no transposes)

    ref = _reference(h, batch, torch_params, num_graphs)

    # f32 path, small tiles: exercises multi-tile CSR accumulation on both splits.
    out_f32 = readout_forward(h, batch, params, num_graphs,
                              tile_n=128, num_splits=2, compute_dtype=jnp.float32)
    out_f32 = jax.block_until_ready(out_f32)
    assert out_f32.shape == (num_graphs, out_size)
    assert jnp.allclose(out_f32, ref, atol=1e-3, rtol=1e-3), (out_f32, ref)

    # Default path: bf16 MXU/EUP operands, f32 accumulation, auto tile size.
    out_bf16 = readout_forward(h, batch, params, num_graphs)
    out_bf16 = jax.block_until_ready(out_bf16)
    rel = jnp.linalg.norm(out_bf16 - ref) / (jnp.linalg.norm(ref) + 1e-8)
    assert jnp.isfinite(rel) and rel < 5e-2, rel

    print("KERNEL_OK")
</pallas_src>

<mosaic_0001>
module attributes {stable_mosaic.version = 11 : i64} {
  func.func @node_partial_kernel(%arg0: i32, %arg1: i32, %arg2: memref<5xi32, #tpu.memory_space<smem>>, %arg3: memref<4xi32, #tpu.memory_space<smem>>, %arg4: memref<4xi32, #tpu.memory_space<smem>>, %arg5: memref<32x128xf32, #tpu.memory_space<vmem>>, %arg6: memref<320x32xf32, #tpu.memory_space<vmem>>, %arg7: memref<320x1xf32, #tpu.memory_space<vmem>>, %arg8: memref<1x320x4xf32, #tpu.memory_space<vmem>>) attributes {dimension_semantics = [#tpu.dimension_semantics<parallel>, #tpu.dimension_semantics<arbitrary>], iteration_bounds = array<i64: 2, 2>, scalar_prefetch = 3 : i64, scratch_operands = 0 : i64, tpu.core_type = #tpu.core_type<tc>, window_params = [{transform_indices = @transform_0, window_bounds = array<i64: 32, 128>}, {pipeline_mode = #tpu.pipeline_mode<synchronous>, transform_indices = @transform_1, window_bounds = array<i64: 320, 32>}, {pipeline_mode = #tpu.pipeline_mode<synchronous>, transform_indices = @transform_2, window_bounds = array<i64: 320, 1>}, {transform_indices = @transform_3, window_bounds = array<i64: 1, 320, 4>}]} {
    %c0_i32 = arith.constant 0 : i32
    %0 = arith.cmpi eq, %arg1, %c0_i32 : i32
    %1 = arith.extui %0 : i1 to i32
    %c0_i32_0 = arith.constant 0 : i32
    %2 = arith.cmpi ne, %1, %c0_i32_0 : i32
    scf.if %2 {
      %cst_11 = arith.constant 0.000000e+00 : f32
      %39 = vector.broadcast %cst_11 : f32 to vector<320x4xf32>
      %c0_12 = arith.constant 0 : index
      %c0_13 = arith.constant 0 : index
      %c0_14 = arith.constant 0 : index
      %40 = vector.load %arg8[%c0_12, %c0_13, %c0_14] : memref<1x320x4xf32, #tpu.memory_space<vmem>>, vector<1x320x4xf32>
      %41 = vector.shape_cast %40 : vector<1x320x4xf32> to vector<320x4xf32>
      %42 = vector.shape_cast %39 : vector<320x4xf32> to vector<1x320x4xf32>
      tpu.vector_store %arg8[%c0_12, %c0_13, %c0_14], %42 {strides = array<i32>} : memref<1x320x4xf32, #tpu.memory_space<vmem>>, vector<1x320x4xf32>,
    } else {
    }
    %c0 = arith.constant 0 : index
    %c0_1 = arith.constant 0 : index
    %3 = vector.load %arg6[%c0, %c0_1] : memref<320x32xf32, #tpu.memory_space<vmem>>, vector<320x32xf32>
    %c0_2 = arith.constant 0 : index
    %c0_3 = arith.constant 0 : index
    %4 = vector.load %arg5[%c0_2, %c0_3] : memref<32x128xf32, #tpu.memory_space<vmem>>, vector<32x128xf32>
    %cst = arith.constant dense<0.000000e+00> : vector<320x128xf32>
    %5 = tpu.matmul %3, %4, %cst {dimension_numbers = #tpu.dot_dimension_numbers<[1], [0], [0], [1], [0, 0, 1, 1], [], []>} : vector<320x32xf32>, vector<32x128xf32>, vector<320x128xf32> -> vector<320x128xf32>
    %c0_4 = arith.constant 0 : index
    %c0_5 = arith.constant 0 : index
    %6 = vector.load %arg7[%c0_4, %c0_5] : memref<320x1xf32, #tpu.memory_space<vmem>>, vector<320x1xf32>
    %7 = vector.broadcast %6 : vector<320x1xf32> to vector<320x128xf32>
    %8 = arith.addf %5, %7 : vector<320x128xf32>
    %cst_6 = arith.constant 0.000000e+00 : f32
    %9 = vector.broadcast %cst_6 : f32 to vector<320x128xf32>
    %10 = arith.maximumf %8, %9 : vector<320x128xf32>
    %11 = vector.broadcast %cst_6 : f32 to vector<320x128xf32>
    %12 = arith.subf %8, %11 : vector<320x128xf32>
    %13 = arith.cmpf one, %12, %12 : vector<320x128xf32>
    %14 = vector.broadcast %cst_6 : f32 to vector<320x128xf32>
    %15 = arith.addf %8, %14 : vector<320x128xf32>
    %16 = math.absf %12 : vector<320x128xf32>
    %cst_7 = arith.constant 0.000000e+00 : f32
    %17 = vector.broadcast %cst_7 : f32 to vector<320x128xf32>
    %18 = arith.subf %17, %16 : vector<320x128xf32>
    %19 = math.exp %18 : vector<320x128xf32>
    %20 = math.log1p %19 : vector<320x128xf32>
    %21 = arith.addf %10, %20 : vector<320x128xf32>
    %22 = arith.select %13, %15, %21 : vector<320x128xi1>, vector<320x128xf32>
    %cst_8 = arith.constant 0.693147182 : f32
    %23 = vector.broadcast %cst_8 : f32 to vector<320x128xf32>
    %24 = arith.subf %22, %23 : vector<320x128xf32>
    %c2_i32 = arith.constant 2 : i32
    %25 = arith.muli %arg0, %c2_i32 : i32
    %26 = arith.addi %25, %arg1 : i32
    %c128_i32 = arith.constant 128 : i32
    %27 = arith.muli %26, %c128_i32 : i32
    %28 = tpu.iota {dimensions = array<i32: 1>} : vector<1x128xi32>
    %29 = vector.broadcast %27 : i32 to vector<1x128xi32>
    %30 = arith.addi %29, %28 : vector<1x128xi32>
    %31 = tpu.iota {dimensions = array<i32: 1>} : vector<1x4xi32>
    %32 = arith.index_cast %26 : i32 to index
    %33 = memref.load %arg3[%32] : memref<4xi32, #tpu.memory_space<smem>>
    %34 = arith.index_cast %26 : i32 to index
    %35 = memref.load %arg4[%34] : memref<4xi32, #tpu.memory_space<smem>>
    %c1_i32 = arith.constant 1 : i32
    %36 = arith.addi %35, %c1_i32 : i32
    %c0_i32_9 = arith.constant 0 : i32
    %37 = arith.subi %36, %33 : i32
    %38 = arith.addi %33, %37 : i32
    %c1_i32_10 = arith.constant 1 : i32
    scf.for %arg9 = %33 to %38 step %c1_i32_10  : i32 {
      %39 = arith.index_cast %arg9 : i32 to index
      %40 = memref.load %arg2[%39] : memref<5xi32, #tpu.memory_space<smem>>
      %c1_i32_11 = arith.constant 1 : i32
      %41 = arith.addi %arg9, %c1_i32_11 : i32
      %42 = arith.index_cast %41 : i32 to index
      %43 = memref.load %arg2[%42] : memref<5xi32, #tpu.memory_space<smem>>
      %44 = vector.broadcast %40 : i32 to vector<1x128xi32>
      %45 = arith.cmpi sge, %30, %44 : vector<1x128xi32>
      %46 = vector.broadcast %43 : i32 to vector<1x128xi32>
      %47 = arith.cmpi slt, %30, %46 : vector<1x128xi32>
      %48 = arith.andi %45, %47 : vector<1x128xi1>
      %cst_12 = arith.constant 0.000000e+00 : f32
      %49 = vector.shape_cast %48 : vector<1x128xi1> to vector<1x128xi1>
      %50 = vector.broadcast %49 : vector<1x128xi1> to vector<320x128xi1>
      %51 = vector.broadcast %cst_12 : f32 to vector<320x128xf32>
      %52 = arith.select %50, %24, %51 : vector<320x128xi1>, vector<320x128xf32>
      %cst_13 = arith.constant dense<0.000000e+00> : vector<320xf32>
      %53 = vector.multi_reduction <add>, %52, %cst_13 [1] : vector<320x128xf32> to vector<320xf32>
      %54 = vector.shape_cast %53 : vector<320xf32> to vector<320x1xf32>
      %c0_14 = arith.constant 0 : index
      %c0_15 = arith.constant 0 : index
      %c0_16 = arith.constant 0 : index
      %55 = vector.load %arg8[%c0_14, %c0_15, %c0_16] : memref<1x320x4xf32, #tpu.memory_space<vmem>>, vector<1x320x4xf32>
      %56 = vector.shape_cast %55 : vector<1x320x4xf32> to vector<320x4xf32>
      %57 = vector.broadcast %arg9 : i32 to vector<1x4xi32>
      %58 = arith.cmpi eq, %31, %57 : vector<1x4xi32>
      %cst_17 = arith.constant 0.000000e+00 : f32
      %59 = vector.shape_cast %58 : vector<1x4xi1> to vector<1x4xi1>
      %60 = vector.broadcast %59 : vector<1x4xi1> to vector<320x4xi1>
      %61 = vector.shape_cast %54 : vector<320x1xf32> to vector<320x1xf32>
      %62 = vector.broadcast %61 : vector<320x1xf32> to vector<320x4xf32>
      %63 = vector.broadcast %cst_17 : f32 to vector<320x4xf32>
      %64 = arith.select %60, %62, %63 : vector<320x4xi1>, vector<320x4xf32>
      %65 = arith.addf %56, %64 : vector<320x4xf32>
      %c0_18 = arith.constant 0 : index
      %c0_19 = arith.constant 0 : index
      %c0_20 = arith.constant 0 : index
      %66 = vector.load %arg8[%c0_18, %c0_19, %c0_20] : memref<1x320x4xf32, #tpu.memory_space<vmem>>, vector<1x320x4xf32>
      %67 = vector.shape_cast %66 : vector<1x320x4xf32> to vector<320x4xf32>
      %68 = vector.shape_cast %65 : vector<320x4xf32> to vector<1x320x4xf32>
      tpu.vector_store %arg8[%c0_18, %c0_19, %c0_20], %68 {strides = array<i32>} : memref<1x320x4xf32, #tpu.memory_space<vmem>>, vector<1x320x4xf32>,
    }
    return
  }
  func.func @transform_0(%arg0: i32, %arg1: i32, %arg2: memref<5xi32, #tpu.memory_space<smem>>, %arg3: memref<4xi32, #tpu.memory_space<smem>>, %arg4: memref<4xi32, #tpu.memory_space<smem>>) -> (i32, i32) {
    %c2_i32 = arith.constant 2 : i32
    %0 = arith.muli %arg0, %c2_i32 : i32
    %1 = arith.addi %0, %arg1 : i32
    %c0_i32 = arith.constant 0 : i32
    %c0_i32_0 = arith.constant 0 : i32
    return %c0_i32, %1 : i32, i32
  }
  func.func @transform_1(%arg0: i32, %arg1: i32, %arg2: memref<5xi32, #tpu.memory_space<smem>>, %arg3: memref<4xi32, #tpu.memory_space<smem>>, %arg4: memref<4xi32, #tpu.memory_space<smem>>) -> (i32, i32) {
    %c0_i32 = arith.constant 0 : i32
    %c0_i32_0 = arith.constant 0 : i32
    %c0_i32_1 = arith.constant 0 : i32
    return %c0_i32, %c0_i32_0 : i32, i32
  }
  func.func @transform_2(%arg0: i32, %arg1: i32, %arg2: memref<5xi32, #tpu.memory_space<smem>>, %arg3: memref<4xi32, #tpu.memory_space<smem>>, %arg4: memref<4xi32, #tpu.memory_space<smem>>) -> (i32, i32) {
    %c0_i32 = arith.constant 0 : i32
    %c0_i32_0 = arith.constant 0 : i32
    %c0_i32_1 = arith.constant 0 : i32
    return %c0_i32, %c0_i32_0 : i32, i32
  }
  func.func @transform_3(%arg0: i32, %arg1: i32, %arg2: memref<5xi32, #tpu.memory_space<smem>>, %arg3: memref<4xi32, #tpu.memory_space<smem>>, %arg4: memref<4xi32, #tpu.memory_space<smem>>) -> (i32, i32, i32) {
    %c0_i32 = arith.constant 0 : i32
    %c0_i32_0 = arith.constant 0 : i32
    %c0_i32_1 = arith.constant 0 : i32
    return %arg0, %c0_i32, %c0_i32_0 : i32, i32, i32
  }
}

</mosaic_0001>

<bundles_post_ra>
// kernel: tpu_custom_call.1
= control target key start
LH: loop header
LB: loop body
LE: loop exit
PB: predicated region body
PF: predicated region fallthrough
CT: control target
= control target key end

     0   :  { %s2440_s27 = smov [#allocation3]   ;;  %s2441_s28 = smov [#allocation4]   ;;  %s3901_s0 = inlined_call_operand.vmem [shape: s32[5], index: 0, kind: input, shape index: {}]   ;;  %s3902_s3 = inlined_call_operand.vmem [shape: f32[32,512], index: 3, kind: input, shape index: {}]   ;;  %s3903_s4 = inlined_call_operand.vmem [shape: f32[320,32], index: 4, kind: input, shape index: {}]   ;;  %s3904_s5 = inlined_call_operand.vmem [shape: f32[320,1], index: 5, kind: input, shape index: {}]   ;;  %s3905_s6 = inlined_call_operand.vmem [shape: f32[2,320,4], index: 6, kind: output, shape index: {}]   ;;  %s3906_s1 = inlined_call_operand.vmem [shape: s32[4], index: 1, kind: input, shape index: {}]   ;;  %s3907_s2 = inlined_call_operand.vmem [shape: s32[4], index: 2, kind: input, shape index: {}]  }
   0x1   :  { %s12_s23 = sshll.u32 %s3901_s0, 4  ;;  %s17_s26 = sshll.u32 %s3906_s1, 4  ;;  %s13_s23 = int_to_ptr.vmem [resolvable:$true] %s12_s23  ;;  %s18_s26 = int_to_ptr.vmem [resolvable:$true] %s17_s26 }
   0x2   :  { %15 = dma.vmem_to_smem %s13_s23, 16, %s2440_s27, [#allocation2] }
   0x3   :  { %20 = dma.vmem_to_smem %s18_s26, 16, %s2441_s28, [#allocation2] }
   0x4   :  { %s22_s7 = sshll.u32 %s3907_s2, 4  ;;  %s2442_s8 = smov [#allocation5]   ;;  %s23_s7 = int_to_ptr.vmem [resolvable:$true] %s22_s7 }
   0x5   :  { %25 = dma.vmem_to_smem %s23_s7, 16, %s2442_s8, [#allocation2] }
   0x6   :  { %2406 = dma.done.wait [#allocation2], 48 }
   0x7   :  { %2407 = vsyncadd [#allocation2], 4294967248 }
   0x8   :  { %28 = sfence }
   0x9   :  { %s2489_s0 = smov 0   ;;  %s2491_s9 = smov 0  }
   0xa   :  { %s2493_s1 = smov 0   ;;  %s2495_s10 = smov 0  }
   0xb   :  { %s2497_s11 = smov 0   ;;  %s2499_s12 = smov 0  }
   0xc   :  { %s2501_s13 = smov 0  }
   0xd LB: > { %s43_s2 = sadd.s32 1, %s2426_s11  ;;  %s46_s14 = sadd.s32 1, %s2430_s12  ;;  %s2434_s13 = sphi %s2501_s13, %s34_s13   ;;  %s2430_s12 = sphi %s2499_s12, %s3950_s12   ;;  %s2426_s11 = sphi %s2497_s11, %s3949_s11   ;;  %s2422_s10 = sphi %s2495_s10, %s3948_s10   ;;  %s2418_s1 = sphi %s2493_s1, %s3947_s1   ;;  %s2414_s9 = sphi %s2491_s9, %s3946_s9   ;;  %s2410_s0 = sphi %s2489_s0, %s3945_s0  }
   0xe   : > { %p44_p0 = scmp.ge.s32.totalorder %s43_s2, 2  ;;  %p64_p1 = scmp.ne.s32.totalorder %s2414_s9, %s2410_s0 }
   0xf   : > { %p65_p2 = scmp.eq.s32.totalorder %s2434_s13, 0  ;;  %s1998_s15 = sshll.u32 %s2430_s12, 1 }
  0x10   : > { %s3952_s2 = smov (%p44_p0, %s43_s2), 0  ;;  %s3954_s14 = smov (!%p44_p0, %s46_s14), %s2430_s12 }
  0x11   : > { %p48_p3 = scmp.ge.s32.totalorder %s3954_s14, 2  ;;  %p66_p4 = por %p65_p2, %p64_p1 }
  0x12   : > { %s51_s16 = sadd.s32 %s2426_s11, %s1998_s15  ;;  %s57_s20 = sadd.s32 1, %s2414_s9 }
  0x13   : > { %s3956_s14 = smov (%p48_p3, %s3954_s14), 0  ;;  %p2001_p6 = scmp.ge.s32.totalorder %s2434_s13, 4 }
  0x14   : > { %s1999_s17 = sshll.u32 %s3956_s14, 1 }
  0x15   : > { %s53_s18 = sadd.s32 %s1999_s17, %s3952_s2  ;;  %164 = sbr.rel (%p2001_p6) target bundleno = 34 (0x22), region = 24 }
  0x16   : > { %s54_s19 = ssub.s32 %s51_s16, %s53_s18 }
  0x17   : > { %p55_p5 = scmp.eq.s32.totalorder %s54_s19, 0 }
  0x19   : > { %s2540_s21 = scalar_select %p55_p5, %s2414_s9, %s57_s20  }
  0x1a   : > { %167 = sbr.rel (!%p66_p4) target bundleno = 34 (0x22), region = 28  ;;  %s169_s22 = sand.u32 (%p66_p4), 1, %s2414_s9  }
  0x1b   : > { %s2004_s23 = sshll.u32 (%p66_p4), %s51_s16, 3  ;;  %s2002_s24 = sshll.u32 (%p66_p4), %s169_s22, 5 }
  0x1c   : > { %s175_s27 = scalar_lea.vmem (%p66_p4), %s3902_s3, %s2004_s23  ;;  %s171_s28 = scalar_lea.vmem (%p66_p4), [#allocation6], %s2002_s24 }
  0x1d   : > { %v210_v0 = vld [vmem:[%s175_s27] sm:$0xff] (%p66_p4) }
  0x1e   : > { %v212_v1 = vld [vmem:[%s175_s27 + $0x20] sm:$0xff] (%p66_p4)  ;;  %211 = vst [vmem:[%s171_s28] sm:$0xff] (%p66_p4), %v210_v0 }
  0x1f   : > { %v214_v2 = vld [vmem:[%s175_s27 + $0x40] sm:$0xff]  ;;  %213 = vst [vmem:[%s171_s28 + $0x8] sm:$0xff] %v212_v1 }
  0x20   : > { %v216_v3 = vld [vmem:[%s175_s27 + $0x60] sm:$0xff]  ;;  %215 = vst [vmem:[%s171_s28 + $0x10] sm:$0xff] %v214_v2 }
  0x21   : > { %217 = vst [vmem:[%s171_s28 + $0x18] sm:$0xff] %v216_v3 }
  0x22 PF: > { %p2005_p7 = scmp.ge.s32.totalorder %s2434_s13, 1  ;;  %p222_p8 = scmp.lt.s32.totalorder %s2434_s13, 5 }
  0x24   : > { %p223_p9 = pnand %p2005_p7, %p222_p8 }
  0x26   : > { %226 = sbr.rel (%p223_p9) target bundleno = 677 (0x2a5), region = 66 }
  0x2b   : > { %s229_s29 = sand.u32 1, %s2410_s0   ;;  %p254_p10 = scmp.lt.s32.totalorder %s2422_s10, 1 }
  0x2c   : > { %s2006_s30 = sshll.u32 %s229_s29, 5  ;;  %p2008_p11 = scmp.ne.s32.totalorder %s2418_s1, 0 }
  0x2d   : > { %s255_s7 = scalar_select %p254_p10, %s2422_s10, 1 }
  0x2e   : > { %s2557_s18 = scalar_lea.vmem [#allocation6], %s2006_s30  ;;  %262 = sbr.rel (%p2008_p11) target bundleno = 92 (0x5c), region = 74 }
  0x2f   : > { %s2105_s8 = smul.u32 320, %s255_s7 }
  0x31   : > { %s2555_s17 = scalar_lea.vmem %s3905_s6, %s2105_s8 }
  0x33   : > { %vm263_vm0 = vcmask 31744   ;;  %v2443_v4 = vmov 0.0  }
  0x34   : > { %264 = vst.msk [vmem:[%s2555_s17] sm:$0xff] %vm263_vm0, %v2443_v4 }
  0x35   : > { %265 = vst.msk [vmem:[%s2555_s17 + $0x8] sm:$0xff] %vm263_vm0, %v2443_v4 }
  0x36   : > { %266 = vst.msk [vmem:[%s2555_s17 + $0x10] sm:$0xff] %vm263_vm0, %v2443_v4 }
  0x37   : > { %267 = vst.msk [vmem:[%s2555_s17 + $0x18] sm:$0xff] %vm263_vm0, %v2443_v4 }
  0x38   : > { %268 = vst.msk [vmem:[%s2555_s17 + $0x20] sm:$0xff] %vm263_vm0, %v2443_v4 }
  0x39   : > { %269 = vst.msk [vmem:[%s2555_s17 + $0x28] sm:$0xff] %vm263_vm0, %v2443_v4 }
  0x3a   : > { %270 = vst.msk [vmem:[%s2555_s17 + $0x30] sm:$0xff] %vm263_vm0, %v2443_v4 }
  0x3b   : > { %271 = vst.msk [vmem:[%s2555_s17 + $0x38] sm:$0xff] %vm263_vm0, %v2443_v4 }
  0x3c   : > { %272 = vst.msk [vmem:[%s2555_s17 + $0x40] sm:$0xff] %vm263_vm0, %v2443_v4 }
  0x3d   : > { %273 = vst.msk [vmem:[%s2555_s17 + $0x48] sm:$0xff] %vm263_vm0, %v2443_v4 }
  0x3e   : > { %274 = vst.msk [vmem:[%s2555_s17 + $0x50] sm:$0xff] %vm263_vm0, %v2443_v4 }
  0x3f   : > { %275 = vst.msk [vmem:[%s2555_s17 + $0x58] sm:$0xff] %vm263_vm0, %v2443_v4 }
  0x40   : > { %276 = vst.msk [vmem:[%s2555_s17 + $0x60] sm:$0xff] %vm263_vm0, %v2443_v4 }
  0x41   : > { %277 = vst.msk [vmem:[%s2555_s17 + $0x68] sm:$0xff] %vm263_vm0, %v2443_v4 }
  0x42   : > { %278 = vst.msk [vmem:[%s2555_s17 + $0x70] sm:$0xff] %vm263_vm0, %v2443_v4 }
  0x43   : > { %279 = vst.msk [vmem:[%s2555_s17 + $0x78] sm:$0xff] %vm263_vm0, %v2443_v4 }
  0x44   : > { %280 = vst.msk [vmem:[%s2555_s17 + $0x80] sm:$0xff] %vm263_vm0, %v2443_v4 }
  0x45   : > { %281 = vst.msk [vmem:[%s2555_s17 + $0x88] sm:$0xff] %vm263_vm0, %v2443_v4 }
  0x46   : > { %282 = vst.msk [vmem:[%s2555_s17 + $0x90] sm:$0xff] %vm263_vm0, %v2443_v4 }
  0x47   : > { %283 = vst.msk [vmem:[%s2555_s17 + $0x98] sm:$0xff] %vm263_vm0, %v2443_v4 }
  0x48   : > { %284 = vst.msk [vmem:[%s2555_s17 + $0xa0] sm:$0xff] %vm263_vm0, %v2443_v4 }
  0x49   : > { %285 = vst.msk [vmem:[%s2555_s17 + $0xa8] sm:$0xff] %vm263_vm0, %v2443_v4 }
  0x4a   : > { %286 = vst.msk [vmem:[%s2555_s17 + $0xb0] sm:$0xff] %vm263_vm0, %v2443_v4 }
  0x4b   : > { %287 = vst.msk [vmem:[%s2555_s17 + $0xb8] sm:$0xff] %vm263_vm0, %v2443_v4 }
  0x4c   : > { %288 = vst.msk [vmem:[%s2555_s17 + $0xc0] sm:$0xff] %vm263_vm0, %v2443_v4 }
  0x4d   : > { %289 = vst.msk [vmem:[%s2555_s17 + $0xc8] sm:$0xff] %vm263_vm0, %v2443_v4 }
  0x4e   : > { %290 = vst.msk [vmem:[%s2555_s17 + $0xd0] sm:$0xff] %vm263_vm0, %v2443_v4 }
  0x4f   : > { %291 = vst.msk [vmem:[%s2555_s17 + $0xd8] sm:$0xff] %vm263_vm0, %v2443_v4 }
  0x50   : > { %292 = vst.msk [vmem:[%s2555_s17 + $0xe0] sm:$0xff] %vm263_vm0, %v2443_v4 }
  0x51   : > { %293 = vst.msk [vmem:[%s2555_s17 + $0xe8] sm:$0xff] %vm263_vm0, %v2443_v4 }
  0x52   : > { %294 = vst.msk [vmem:[%s2555_s17 + $0xf0] sm:$0xff] %vm263_vm0, %v2443_v4 }
  0x53   : > { %295 = vst.msk [vmem:[%s2555_s17 + $0xf8] sm:$0xff] %vm263_vm0, %v2443_v4 }
  0x54   : > { %296 = vst.msk [vmem:[%s2555_s17 + $0x100] sm:$0xff] %vm263_vm0, %v2443_v4 }
  0x55   : > { %297 = vst.msk [vmem:[%s2555_s17 + $0x108] sm:$0xff] %vm263_vm0, %v2443_v4 }
  0x56   : > { %298 = vst.msk [vmem:[%s2555_s17 + $0x110] sm:$0xff] %vm263_vm0, %v2443_v4 }
  0x57   : > { %299 = vst.msk [vmem:[%s2555_s17 + $0x118] sm:$0xff] %vm263_vm0, %v2443_v4 }
  0x58   : > { %300 = vst.msk [vmem:[%s2555_s17 + $0x120] sm:$0xff] %vm263_vm0, %v2443_v4 }
  0x59   : > { %301 = vst.msk [vmem:[%s2555_s17 + $0x128] sm:$0xff] %vm263_vm0, %v2443_v4 }
  0x5a   : > { %302 = vst.msk [vmem:[%s2555_s17 + $0x130] sm:$0xff] %vm263_vm0, %v2443_v4 }
  0x5b   : > { %303 = vst.msk [vmem:[%s2555_s17 + $0x138] sm:$0xff] %vm263_vm0, %v2443_v4 }
  0x5c PF: > { %v347_v5 = vld [vmem:[%s2557_s18 + $0x18] sm:$0xff]  ;;  %v2444_v6 = vmov 0   ;;  %v352_v7 = vld [vmem:[%s3904_s5 + $0x20] sm:$0xff]  ;;  %v350_v8 = vld [vmem:[%s3904_s5 + $0x10] sm:$0xff]  ;;  %vm588_vm1 = vcmask 261120   ;;  %s2089_s26 = sshll.u32 %s2422_s10, 1 }
  0x5d   : > { %2177 = vset.pattern.permute.xlu2 %v2444_v6  ;;  %2176 = vset.pattern.permute.xlu1 %v2444_v6  ;;  %v348_v9 = vld [vmem:[%s3904_s5] sm:$0xff]  ;;  %v346_v10 = vld [vmem:[%s2557_s18 + $0x10] sm:$0xff]  ;;  %v345_v11 = vld [vmem:[%s2557_s18 + $0x8] sm:$0xff]  ;;  %s3159_s27 = sadd.s32 %s2418_s1, %s2089_s26 }
  0x5e   : > { %2175 = vset.pattern.permute.xlu0 %v2444_v6  ;;  %721 = vmatpush.msra.mxu0 %v347_v5  ;;  %v344_v12 = vld [vmem:[%s2557_s18] sm:$0xff]  ;;  %v314_v14 = vld [vmem:[%s3903_s4 + $0x50] sm:$0xff]  ;;  %v353_v17 = vld [vmem:[%s3904_s5 + $0x28] sm:$0xff]  ;;  %s3165_s10 = sld [smem:[#allocation5 + %s3159_s27]]  ;;  %s2090_s29 = sshll.u32 %s3159_s27, 7 }
  0x5f   : > { %2093 = vmatpush.msra.mxu1 %v347_v5  ;;  %2094 = vmatpush.msra.mxu2 %v347_v5  ;;  %v304_v13 = vld [vmem:[%s3903_s4] sm:$0xff]  ;;  %v334_v16 = vld [vmem:[%s3903_s4 + $0xf0] sm:$0xff]  ;;  %v351_v18 = vld [vmem:[%s3904_s5 + $0x18] sm:$0xff]  ;;  %s3178_s1 = sld [smem:[#allocation4 + %s3159_s27]]  }
  0x60   : > { %2095 = vmatpush.msra.mxu3 %v347_v5  ;;  %410 = vperm.xlu2 %2177, %v352_v7   ;;  %v324_v15 = vld [vmem:[%s3903_s4 + $0xa0] sm:$0xff]  ;;  %v349_v19 = vld [vmem:[%s3904_s5 + $0x8] sm:$0xff]  ;;  %v315_v21 = vld [vmem:[%s3903_s4 + $0x58] sm:$0xff] }
  0x61   : > { %400 = vperm.xlu1 %2176, %v350_v8   ;;  %390 = vperm.xlu0 %2175, %v348_v9   ;;  %v305_v20 = vld [vmem:[%s3903_s4 + $0x8] sm:$0xff]  ;;  %v335_v23 = vld [vmem:[%s3903_s4 + $0xf8] sm:$0xff]  ;;  %v356_v24 = vld [vmem:[%s3904_s5 + $0x40] sm:$0xff] }
  0x62   : > { %722 = vmatpush.msra.mxu0 %v346_v10  ;;  %2096 = vmatpush.msra.mxu1 %v346_v10  ;;  %v325_v22 = vld [vmem:[%s3903_s4 + $0xa8] sm:$0xff]  ;;  %v355_v25 = vld [vmem:[%s3904_s5 + $0x38] sm:$0xff]  ;;  %v354_v26 = vld [vmem:[%s3904_s5 + $0x30] sm:$0xff] }
  0x63   : > { %2097 = vmatpush.msra.mxu2 %v346_v10  ;;  %2098 = vmatpush.msra.mxu3 %v346_v10  ;;  %v306_v27 = vld [vmem:[%s3903_s4 + $0x10] sm:$0xff]  ;;  %v316_v28 = vld [vmem:[%s3903_s4 + $0x60] sm:$0xff]  ;;  %v359_v31 = vld [vmem:[%s3904_s5 + $0x58] sm:$0xff] }
  0x64   : > { %723 = vmatpush.msra.mxu0 %v345_v11  ;;  %2099 = vmatpush.msra.mxu1 %v345_v11  ;;  %v326_v29 = vld [vmem:[%s3903_s4 + $0xb0] sm:$0xff]  ;;  %v336_v30 = vld [vmem:[%s3903_s4 + $0x100] sm:$0xff]  ;;  %v357_v33 = vld [vmem:[%s3904_s5 + $0x48] sm:$0xff]  ;;  %s1615_s28 = sadd.s32 1, %s3165_s10 }
  0x65   : > { %2100 = vmatpush.msra.mxu2 %v345_v11  ;;  %2101 = vmatpush.msra.mxu3 %v345_v11  ;;  %v358_v32 = vld [vmem:[%s3904_s5 + $0x50] sm:$0xff]  ;;  %v307_v34 = vld [vmem:[%s3903_s4 + $0x18] sm:$0xff]  ;;  %v317_v35 = vld [vmem:[%s3903_s4 + $0x68] sm:$0xff]  ;;  %p1961_p12 = scmp.ge.s32.totalorder %s3178_s1, %s1615_s28 }
  0x66   : > { %724 = vmatpush.msra.mxu0 %v344_v12  ;;  %2102 = vmatpush.msra.mxu1 %v344_v12  ;;  %v327_v36 = vld [vmem:[%s3903_s4 + $0xb8] sm:$0xff]  ;;  %v337_v37 = vld [vmem:[%s3903_s4 + $0x108] sm:$0xff]  ;;  %v362_v38 = vld [vmem:[%s3904_s5 + $0x70] sm:$0xff] }
  0x67   : > { %2103 = vmatpush.msra.mxu2 %v344_v12  ;;  %2104 = vmatpush.msra.mxu3 %v344_v12  ;;  %v361_v39 = vld [vmem:[%s3904_s5 + $0x68] sm:$0xff]  ;;  %v360_v40 = vld [vmem:[%s3904_s5 + $0x60] sm:$0xff]  ;;  %v318_v42 = vld [vmem:[%s3903_s4 + $0x70] sm:$0xff] }
  0x68   : > { %2009 = vmatmul.msk.f32.vlgmr.msra.gmra.mxu0 %vm588_vm1, %v304_v13  ;;  %2019 = vmatmul.msk.f32.vlgmr.msra.gmra.mxu1 %vm588_vm1, %v314_v14  ;;  %v308_v41 = vld [vmem:[%s3903_s4 + $0x20] sm:$0xff]  ;;  %v338_v44 = vld [vmem:[%s3903_s4 + $0x110] sm:$0xff]  ;;  %v365_v45 = vld [vmem:[%s3904_s5 + $0x88] sm:$0xff] }
  0x69   : > { %2029 = vmatmul.msk.f32.vlgmr.msra.gmra.mxu2 %vm588_vm1, %v324_v15  ;;  %2039 = vmatmul.msk.f32.vlgmr.msra.gmra.mxu3 %vm588_vm1, %v334_v16  ;;  %v328_v43 = vld [vmem:[%s3903_s4 + $0xc0] sm:$0xff]  ;;  %v363_v47 = vld [vmem:[%s3904_s5 + $0x78] sm:$0xff]  ;;  %v309_v48 = vld [vmem:[%s3903_s4 + $0x28] sm:$0xff] }
  0x6a   : > { %415 = vperm.xlu2 %2177, %v353_v17   ;;  %405 = vperm.xlu1 %2176, %v351_v18   ;;  %v364_v46 = vld [vmem:[%s3904_s5 + $0x80] sm:$0xff]  ;;  %v319_v49 = vld [vmem:[%s3903_s4 + $0x78] sm:$0xff]  ;;  %v329_v50 = vld [vmem:[%s3903_s4 + $0xc8] sm:$0xff] }
  0x6b   : > { %395 = vperm.xlu0 %2175, %v349_v19   ;;  %v339_v51 = vld [vmem:[%s3903_s4 + $0x118] sm:$0xff]  ;;  %v368_v52 = vld [vmem:[%s3904_s5 + $0xa0] sm:$0xff]  ;;  %v366_v54 = vld [vmem:[%s3904_s5 + $0x90] sm:$0xff] }
  0x6c   : > { %v367_v53 = vld [vmem:[%s3904_s5 + $0x98] sm:$0xff]  ;;  %v310_v55 = vld [vmem:[%s3903_s4 + $0x30] sm:$0xff]  ;;  %v320_v56 = vld [vmem:[%s3903_s4 + $0x80] sm:$0xff] }
  0x6d   : > { %v330_v57 = vld [vmem:[%s3903_s4 + $0xd0] sm:$0xff]  ;;  %v340_v58 = vld [vmem:[%s3903_s4 + $0x120] sm:$0xff]  ;;  %v371_v59 = vld [vmem:[%s3904_s5 + $0xb8] sm:$0xff] }
  0x6e   : > { %v370_v60 = vld [vmem:[%s3904_s5 + $0xb0] sm:$0xff]  ;;  %v369_v61 = vld [vmem:[%s3904_s5 + $0xa8] sm:$0xff]  ;;  %v311_v62 = vld [vmem:[%s3903_s4 + $0x38] sm:$0xff] }
  0x6f   : > { %v321_v63 = vld [vmem:[%s3903_s4 + $0x88] sm:$0xff]  ;;  %v331_v0 = vld [vmem:[%s3903_s4 + $0xd8] sm:$0xff]  ;;  %v374_v2 = vld [vmem:[%s3904_s5 + $0xd0] sm:$0xff] }
  0x70   : > { %2010 = vmatmul.msk.f32.gmra.mxu0 %vm588_vm1, %v305_v20  ;;  %2020 = vmatmul.msk.f32.gmra.mxu1 %vm588_vm1, %v315_v21  ;;  %v341_v1 = vld [vmem:[%s3903_s4 + $0x128] sm:$0xff]  ;;  %v372_v4 = vld [vmem:[%s3904_s5 + $0xc0] sm:$0xff]  ;;  %v322_v6 = vld [vmem:[%s3903_s4 + $0x90] sm:$0xff] }
  0x71   : > { %2030 = vmatmul.msk.f32.gmra.mxu2 %vm588_vm1, %v325_v22  ;;  %2040 = vmatmul.msk.f32.gmra.mxu3 %vm588_vm1, %v335_v23  ;;  %v373_v3 = vld [vmem:[%s3904_s5 + $0xc8] sm:$0xff]  ;;  %v312_v5 = vld [vmem:[%s3903_s4 + $0x40] sm:$0xff]  ;;  %v342_v8 = vld [vmem:[%s3903_s4 + $0x130] sm:$0xff] }
  0x72   : > { %430 = vperm.xlu2 %2177, %v356_v24   ;;  %425 = vperm.xlu1 %2176, %v355_v25   ;;  %v332_v7 = vld [vmem:[%s3903_s4 + $0xe0] sm:$0xff]  ;;  %v377_v9 = vld [vmem:[%s3904_s5 + $0xe8] sm:$0xff]  ;;  %v375_v11 = vld [vmem:[%s3904_s5 + $0xd8] sm:$0xff] }
  0x73   : > { %420 = vperm.xlu0 %2175, %v354_v26   ;;  %v376_v10 = vld [vmem:[%s3904_s5 + $0xe0] sm:$0xff]  ;;  %v313_v12 = vld [vmem:[%s3903_s4 + $0x48] sm:$0xff]  ;;  %v323_v13 = vld [vmem:[%s3903_s4 + $0x98] sm:$0xff] }
  0x74   : > { %v333_v14 = vld [vmem:[%s3903_s4 + $0xe8] sm:$0xff]  ;;  %v343_v15 = vld [vmem:[%s3903_s4 + $0x138] sm:$0xff]  ;;  %v380_v16 = vld [vmem:[%s3904_s5 + $0x100] sm:$0xff] }
  0x75   : > { %v379_v17 = vld [vmem:[%s3904_s5 + $0xf8] sm:$0xff]  ;;  %v378_v18 = vld [vmem:[%s3904_s5 + $0xf0] sm:$0xff]  ;;  %v381_v21 = vld [vmem:[%s3904_s5 + $0x108] sm:$0xff] }
  0x76   : > { %v383_v19 = vld [vmem:[%s3904_s5 + $0x118] sm:$0xff]  ;;  %v382_v20 = vld [vmem:[%s3904_s5 + $0x110] sm:$0xff]  ;;  %v385_v24 = vld [vmem:[%s3904_s5 + $0x128] sm:$0xff] }
  0x77   : > { %v386_v23 = vld [vmem:[%s3904_s5 + $0x130] sm:$0xff]  ;;  %v384_v25 = vld [vmem:[%s3904_s5 + $0x120] sm:$0xff] }
  0x78   : > { %2011 = vmatmul.msk.f32.gmra.mxu0 %vm588_vm1, %v306_v27  ;;  %2021 = vmatmul.msk.f32.gmra.mxu1 %vm588_vm1, %v316_v28  ;;  %v387_v27 = vld [vmem:[%s3904_s5 + $0x138] sm:$0xff] }
  0x79   : > { %2031 = vmatmul.msk.f32.gmra.mxu2 %vm588_vm1, %v326_v29  ;;  %2041 = vmatmul.msk.f32.gmra.mxu3 %vm588_vm1, %v336_v30 }
  0x7a   : > { %445 = vperm.xlu2 %2177, %v359_v31   ;;  %440 = vperm.xlu1 %2176, %v358_v32  }
  0x7b   : > { %435 = vperm.xlu0 %2175, %v357_v33  }
  0x80   : > { %2012 = vmatmul.msk.f32.gmra.mxu0 %vm588_vm1, %v307_v34  ;;  %2022 = vmatmul.msk.f32.gmra.mxu1 %vm588_vm1, %v317_v35 }
  0x81   : > { %2032 = vmatmul.msk.f32.gmra.mxu2 %vm588_vm1, %v327_v36  ;;  %2042 = vmatmul.msk.f32.gmra.mxu3 %vm588_vm1, %v337_v37 }
  0x82   : > { %460 = vperm.xlu2 %2177, %v362_v38   ;;  %455 = vperm.xlu1 %2176, %v361_v39  }
  0x83   : > { %450 = vperm.xlu0 %2175, %v360_v40  }
  0x88   : > { %2013 = vmatmul.msk.f32.gmra.mxu0 %vm588_vm1, %v308_v41  ;;  %2023 = vmatmul.msk.f32.gmra.mxu1 %vm588_vm1, %v318_v42 }
  0x89   : > { %2033 = vmatmul.msk.f32.gmra.mxu2 %vm588_vm1, %v328_v43  ;;  %2043 = vmatmul.msk.f32.gmra.mxu3 %vm588_vm1, %v338_v44 }
  0x8a   : > { %475 = vperm.xlu2 %2177, %v365_v45   ;;  %470 = vperm.xlu1 %2176, %v364_v46  }
  0x8b   : > { %465 = vperm.xlu0 %2175, %v363_v47  }
  0x90   : > { %2014 = vmatmul.msk.f32.gmra.mxu0 %vm588_vm1, %v309_v48  ;;  %2024 = vmatmul.msk.f32.gmra.mxu1 %vm588_vm1, %v319_v49 }
  0x91   : > { %2034 = vmatmul.msk.f32.gmra.mxu2 %vm588_vm1, %v329_v50  ;;  %2044 = vmatmul.msk.f32.gmra.mxu3 %vm588_vm1, %v339_v51 }
  0x92   : > { %490 = vperm.xlu2 %2177, %v368_v52   ;;  %485 = vperm.xlu1 %2176, %v367_v53  }
  0x93   : > { %480 = vperm.xlu0 %2175, %v366_v54  }
  0x98   : > { %2015 = vmatmul.msk.f32.gmra.mxu0 %vm588_vm1, %v310_v55  ;;  %2025 = vmatmul.msk.f32.gmra.mxu1 %vm588_vm1, %v320_v56 }
  0x99   : > { %2035 = vmatmul.msk.f32.gmra.mxu2 %vm588_vm1, %v330_v57  ;;  %2045 = vmatmul.msk.f32.gmra.mxu3 %vm588_vm1, %v340_v58 }
  0x9a   : > { %505 = vperm.xlu2 %2177, %v371_v59   ;;  %500 = vperm.xlu1 %2176, %v370_v60  }
  0x9b   : > { %495 = vperm.xlu0 %2175, %v369_v61  }
  0xa0   : > { %2016 = vmatmul.msk.f32.gmra.mxu0 %vm588_vm1, %v311_v62  ;;  %2026 = vmatmul.msk.f32.gmra.mxu1 %vm588_vm1, %v321_v63 }
  0xa1   : > { %2036 = vmatmul.msk.f32.gmra.mxu2 %vm588_vm1, %v331_v0  ;;  %2046 = vmatmul.msk.f32.gmra.mxu3 %vm588_vm1, %v341_v1 }
  0xa2   : > { %520 = vperm.xlu2 %2177, %v374_v2   ;;  %515 = vperm.xlu1 %2176, %v373_v3  }
  0xa3   : > { %510 = vperm.xlu0 %2175, %v372_v4  }
  0xa8   : > { %2017 = vmatmul.msk.f32.gmra.mxu0 %vm588_vm1, %v312_v5  ;;  %2027 = vmatmul.msk.f32.gmra.mxu1 %vm588_vm1, %v322_v6 }
  0xa9   : > { %2037 = vmatmul.msk.f32.gmra.mxu2 %vm588_vm1, %v332_v7  ;;  %2047 = vmatmul.msk.f32.gmra.mxu3 %vm588_vm1, %v342_v8 }
  0xaa   : > { %535 = vperm.xlu2 %2177, %v377_v9   ;;  %530 = vperm.xlu1 %2176, %v376_v10  }
  0xab   : > { %525 = vperm.xlu0 %2175, %v375_v11  }
  0xb0   : > { %2018 = vmatmul.msk.f32.gmra.mxu0 %vm588_vm1, %v313_v12  ;;  %2028 = vmatmul.msk.f32.gmra.mxu1 %vm588_vm1, %v323_v13 }
  0xb1   : > { %2038 = vmatmul.msk.f32.gmra.mxu2 %vm588_vm1, %v333_v14  ;;  %2048 = vmatmul.msk.f32.gmra.mxu3 %vm588_vm1, %v343_v15 }
  0xb2   : > { %550 = vperm.xlu2 %2177, %v380_v16   ;;  %545 = vperm.xlu1 %2176, %v379_v17  }
  0xb3   : > { %540 = vperm.xlu0 %2175, %v378_v18  }
  0xba   : > { %565 = vperm.xlu2 %2177, %v383_v19   ;;  %560 = vperm.xlu1 %2176, %v382_v20   ;;  %v2912_v22 = vpop.permute.xlu2 %410 }
  0xbb   : > { %555 = vperm.xlu0 %2175, %v381_v21  }
  0xc2   : > { %580 = vperm.xlu2 %2177, %v386_v23   ;;  %575 = vperm.xlu1 %2176, %v385_v24  }
  0xc3   : > { %570 = vperm.xlu0 %2175, %v384_v25  }
  0xc4   : > { %v2923_v26 = vpop.permute.xlu2 %415 }
  0xcb   : > { %585 = vperm.xlu0 %2175, %v387_v27  }
  0xcc   : > { %v2928_v28 = vpop.permute.xlu2 %430 }
  0xd3   : > { %v401_v29 = vpop.permute.xlu1 %400  ;;  %v391_v30 = vpop.permute.xlu0 %390 }
  0xd4   : > { %v446_v31 = vpop.permute.xlu2 %445 }
  0xdc   : > { %v2930_v32 = vpop.permute.xlu2 %460  ;;  %v2932_v33 = vpop.permute.xlu1 %405 }
  0xdd   : > { %v396_v34 = vpop.permute.xlu0 %395 }
  0xe4   : > { %v2934_v35 = vpop.permute.xlu2 %475  ;;  %v2936_v36 = vpop.permute.xlu1 %425 }
  0xe5   : > { %v2938_v37 = vpop.permute.xlu0 %420  ;;  %v726_v38 = vpop.f32.mrf.mxu0 }
  0xe6   : > { %v2940_v39 = vadd.f32 %v726_v38, %v391_v30  ;;  %v756_v40 = vpop.f32.mrf.mxu1 }
  0xe8   : > { %v966_v41 = vand.u32 2147483647, %v2940_v39  ;;  %v846_v18 = vmax.f32 %v2940_v39, 0.0  ;;  %vm886_vm2 = vcmp.ne.f32.partialorder %v2940_v39, %v2940_v39 }
  0xea   : > { %v1006_v42 = vsub.f32 0.0, %v966_v41 }
  0xec   : > { %v1046_v43 = vmul.f32 1.442695, %v1006_v42  ;;  %v786_v44 = vpop.f32.mrf.mxu2  ;;  %v491_v45 = vpop.permute.xlu2 %490 }
  0xed   : > { %v441_v46 = vpop.permute.xlu1 %440  ;;  %v2943_v47 = vadd.f32 %v786_v44, %v491_v45  ;;  %v2947_v49 = vpop.permute.xlu0 %435 }
  0xee   : > { %2178 = vpow2.f32 %v1046_v43  ;;  %v2945_v48 = vadd.f32 %v756_v40, %v441_v46  ;;  %v729_v50 = vpop.f32.mrf.mxu0  ;;  %v759_v52 = vpop.f32.mrf.mxu1 }
  0xef   : > { %v2949_v51 = vadd.f32 %v729_v50, %v396_v34  ;;  %v986_v53 = vand.u32 2147483647, %v2943_v47  ;;  %v2954_v57 = vadd.f32 %v759_v52, %v446_v31  ;;  %v2966_v15 = vpop.f32.mrf.mxu3  ;;  %vm906_vm4 = vcmp.ne.f32.partialorder %v2943_v47, %v2943_v47 }
  0xf0   : > { %v976_v54 = vand.u32 2147483647, %v2945_v48  ;;  %v856_v34 = vmax.f32 %v2945_v48, 0.0  ;;  %vm896_vm5 = vcmp.ne.f32.partialorder %v2945_v48, %v2945_v48 }
  0xf1   : > { %v1026_v55 = vsub.f32 0.0, %v986_v53  ;;  %v967_v56 = vand.u32 2147483647, %v2949_v51  ;;  %v977_v3 = vand.u32 2147483647, %v2954_v57  ;;  %v847_v53 = vmax.f32 %v2949_v51, 0.0 }
  0xf2   : > { %v1016_v58 = vsub.f32 0.0, %v976_v54  ;;  %v857_v54 = vmax.f32 %v2954_v57, 0.0  ;;  %vm887_vm6 = vcmp.ne.f32.partialorder %v2949_v51, %v2949_v51  ;;  %vm897_vm11 = vcmp.ne.f32.partialorder %v2954_v57, %v2954_v57 }
  0xf3   : > { %v1086_v60 = vmul.f32 1.442695, %v1026_v55  ;;  %v1007_v61 = vsub.f32 0.0, %v967_v56  ;;  %v1017_v8 = vsub.f32 0.0, %v977_v3 }
  0xf4   : > { %v2179_v59 = vpop.eup %2178  ;;  %v1066_v63 = vmul.f32 1.442695, %v1016_v58  ;;  %v2956_v0 = vpop.permute.xlu2 %505 }
  0xf5   : > { %v1126_v62 = vadd.f32 1.0, %v2179_v59  ;;  %v1129_v1 = vmul.f32 -0.5, %v2179_v59  ;;  %2180 = vpow2.f32 %v1086_v60  ;;  %v1048_v2 = vmul.f32 1.442695, %v1007_v61  ;;  %v451_v4 = vpop.permute.xlu0 %450  ;;  %v2961_v9 = vpop.f32.mrf.mxu2 }
  0xf6   : > { %v732_v5 = vpop.f32.mrf.mxu0  ;;  %v762_v7 = vpop.f32.mrf.mxu1  ;;  %v1068_v12 = vmul.f32 1.442695, %v1017_v8  ;;  %v1132_v14 = vand.u32 2147483647, %v2179_v59 }
  0xf7   : > { %2182 = vlog2.f32 %v1126_v62  ;;  %v2959_v6 = vadd.f32 %v732_v5, %v401_v29  ;;  %v2963_v10 = vadd.f32 %v762_v7, %v451_v4  ;;  %v1130_v11 = vadd.f32 1.0, %v1129_v1  ;;  %v456_v16 = vpop.permute.xlu1 %455 }
  0xf8   : > { %2184 = vpow2.f32 %v1066_v63  ;;  %v866_v29 = vmax.f32 %v2943_v47, 0.0  ;;  %vm1133_vm3 = vcmp.lt.f32.partialorder %v1132_v14, 0.0004427343 }
  0xf9   : > { %2186 = vpow2.f32 %v1048_v2  ;;  %v968_v13 = vand.u32 2147483647, %v2959_v6  ;;  %v978_v23 = vand.u32 2147483647, %v2963_v10  ;;  %v1131_v27 = vmul.f32 %v2179_v59, %v1130_v11 }
  0xfa   : > { %2188 = vpow2.f32 %v1068_v12  ;;  %vm888_vm13 = vcmp.ne.f32.partialorder %v2959_v6, %v2959_v6  ;;  %vm898_vm15 = vcmp.ne.f32.partialorder %v2963_v10, %v2963_v10 }
  0xfb   : > { %v2181_v17 = vpop.eup %2180  ;;  %v1008_v30 = vsub.f32 0.0, %v968_v13  ;;  %v1018_v50 = vsub.f32 0.0, %v978_v23 }
  0xfc   : > { %v1306_v20 = vadd.f32 1.0, %v2181_v17  ;;  %v1309_v21 = vmul.f32 -0.5, %v2181_v17  ;;  %v2974_v44 = vpop.permute.xlu2 %520  ;;  %v1312_v59 = vand.u32 2147483647, %v2181_v17 }
  0xfd   : > { %v2183_v19 = vpop.eup %2182  ;;  %v1050_v55 = vmul.f32 1.442695, %v1008_v30  ;;  %v2980_v56 = vpop.f32.mrf.mxu2  ;;  %v1070_v11 = vmul.f32 1.442695, %v1018_v50 }
  0xfe   : > { %v2185_v24 = vpop.eup %2184  ;;  %v1128_v25 = vmul.f32 0.6931472, %v2183_v19  ;;  %2190 = vlog2.f32 %v1306_v20  ;;  %v1310_v41 = vadd.f32 1.0, %v1309_v21  ;;  %v735_v62 = vpop.f32.mrf.mxu0  ;;  %vm1313_vm7 = vcmp.lt.f32.partialorder %v1312_v59, 0.0004427343 }
  0xff   : > { %v2187_v31 = vpop.eup %2186  ;;  %v1216_v38 = vadd.f32 1.0, %v2185_v24  ;;  %v1219_v42 = vmul.f32 -0.5, %v2185_v24  ;;  %v1222_v3 = vand.u32 2147483647, %v2185_v24  ;;  %v765_v4 = vpop.f32.mrf.mxu1 }
 0x100   : > { %v1134_v40 = vsel %vm1133_vm3, %v1131_v27, %v1128_v25  ;;  %v1135_v43 = vadd.f32 1.0, %v2187_v31  ;;  %v1138_v46 = vmul.f32 -0.5, %v2187_v31  ;;  %v2189_v52 = vpop.eup %2188  ;;  %v1311_v1 = vmul.f32 %v2181_v17, %v1310_v41  ;;  %v2994_v12 = vpop.permute.xlu1 %470 }
 0x101   : > { %v1486_v45 = vadd.f32 %v1134_v40, %v846_v18  ;;  %2192 = vlog2.f32 %v1216_v38  ;;  %v1225_v60 = vadd.f32 1.0, %v2189_v52  ;;  %v1228_v61 = vmul.f32 -0.5, %v2189_v52 }
 0x102   : > { %2194 = vlog2.f32 %v1135_v43  ;;  %v1220_v2 = vadd.f32 1.0, %v1219_v42  ;;  %v1139_v7 = vadd.f32 1.0, %v1138_v46  ;;  %v1141_v8 = vand.u32 2147483647, %v2187_v31  ;;  %v3006_v43 = vpop.permute.xlu0 %465 }
 0x103   : > { %v1526_v58 = vsel %vm886_vm2, %v2940_v39, %v1486_v45  ;;  %2196 = vlog2.f32 %v1225_v60  ;;  %v2992_v39 = vpop.f32.mrf.mxu3  ;;  %v1231_v14 = vand.u32 2147483647, %v2189_v52  ;;  %v2997_v17 = vadd.f32 %v735_v62, %v2932_v33 }
 0x104   : > { %v2986_v63 = vadd.f32 -0.6931472, %v1526_v58  ;;  %v2191_v5 = vpop.eup %2190  ;;  %2198 = vpow2.f32 %v1050_v55  ;;  %v1229_v19 = vadd.f32 1.0, %v1228_v61  ;;  %v2999_v20 = vadd.f32 %v765_v4, %v456_v16  ;;  %v3009_v45 = vpop.permute.xlu2 %535 }
 0x105   : > { %v1308_v13 = vmul.f32 0.6931472, %v2191_v5  ;;  %2200 = vpow2.f32 %v1070_v11  ;;  %v1221_v27 = vmul.f32 %v2185_v24, %v1220_v2  ;;  %vm1223_vm8 = vcmp.lt.f32.partialorder %v1222_v3, 0.0004427343  ;;  %v795_v62 = vpop.f32.mrf.mxu2 }
 0x106   : > { %v1140_v40 = vmul.f32 %v2187_v31, %v1139_v7  ;;  %v969_v41 = vand.u32 2147483647, %v2997_v17  ;;  %vm1142_vm9 = vcmp.lt.f32.partialorder %v1141_v8, 0.0004427343  ;;  %vm3002_vm10 = vcmp.lt.f32.partialorder %v1231_v14, 0.0004427343  ;;  %v738_v14 = vpop.f32.mrf.mxu0 }
 0x107   : > { %v2193_v18 = vpop.eup %2192  ;;  %v1314_v23 = vsel %vm1313_vm7, %v1311_v1, %v1308_v13  ;;  %v979_v16 = vand.u32 2147483647, %v2999_v20  ;;  %v1230_v50 = vmul.f32 %v2189_v52, %v1229_v19  ;;  %v3036_v11 = vadd.f32 %v795_v62, %v2956_v0 }
 0x108   : > { %v2195_v21 = vpop.eup %2194  ;;  %v1218_v25 = vmul.f32 0.6931472, %v2193_v18  ;;  %v1506_v30 = vadd.f32 %v1314_v23, %v866_v29  ;;  %v1009_v61 = vsub.f32 0.0, %v969_v41  ;;  %v3038_v13 = vpop.permute.xlu1 %485  ;;  %vm889_vm0 = vcmp.ne.f32.partialorder %v2997_v17, %v2997_v17 }
 0x109   : > { %v1137_v38 = vmul.f32 0.6931472, %v2195_v21  ;;  %v2197_v46 = vpop.eup %2196  ;;  %v1019_v4 = vsub.f32 0.0, %v979_v16  ;;  %v768_v18 = vpop.f32.mrf.mxu1  ;;  %v989_v0 = vand.u32 2147483647, %v3036_v11  ;;  %v848_v16 = vmax.f32 %v2959_v6, 0.0 }
 0x10a   : > { %v1224_v42 = vsel %vm1223_vm8, %v1221_v27, %v1218_v25  ;;  %v1546_v24 = vsel %vm906_vm4, %v2943_v47, %v1506_v30  ;;  %v2199_v55 = vpop.eup %2198  ;;  %v1227_v60 = vmul.f32 0.6931472, %v2197_v46  ;;  %v1052_v23 = vmul.f32 1.442695, %v1009_v61 }
 0x10b   : > { %v1496_v29 = vadd.f32 %v1224_v42, %v856_v34  ;;  %v1143_v31 = vsel %vm1142_vm9, %v1140_v40, %v1137_v38  ;;  %v3017_v58 = vadd.f32 -0.6931472, %v1546_v24  ;;  %v2201_v1 = vpop.eup %2200  ;;  %v1144_v3 = vadd.f32 1.0, %v2199_v55  ;;  %v3052_v42 = vpop.permute.xlu0 %480 }
 0x10c   : > { %v1487_v59 = vadd.f32 %v1143_v31, %v847_v53  ;;  %v1147_v47 = vmul.f32 -0.5, %v2199_v55  ;;  %v1233_v52 = vsel %vm3002_vm10, %v1230_v50, %v1227_v60  ;;  %v1234_v53 = vadd.f32 1.0, %v2201_v1 }
 0x10d   : > { %v1536_v2 = vsel %vm896_vm5, %v2945_v48, %v1496_v29  ;;  %v1497_v8 = vadd.f32 %v1233_v52, %v857_v54  ;;  %2202 = vlog2.f32 %v1144_v3  ;;  %v822_v48 = vpop.f32.mrf.mxu3  ;;  %v1150_v21 = vand.u32 2147483647, %v2199_v55 }
 0x10e   : > { %v3023_v5 = vadd.f32 -0.6931472, %v1536_v2  ;;  %v1527_v34 = vsel %vm887_vm6, %v2949_v51, %v1487_v59  ;;  %2204 = vlog2.f32 %v1234_v53  ;;  %v1237_v51 = vmul.f32 -0.5, %v2201_v1 }
 0x10f   : > { %v3031_v7 = vadd.f32 -0.6931472, %v1527_v34  ;;  %v1537_v19 = vsel %vm897_vm11, %v2954_v57, %v1497_v8  ;;  %v1072_v25 = vmul.f32 1.442695, %v1019_v4  ;;  %v1148_v27 = vadd.f32 1.0, %v1147_v47  ;;  %v551_v57 = vpop.permute.xlu2 %550 }
 0x110   : > { %v3043_v54 = vadd.f32 -0.6931472, %v1537_v19  ;;  %v1238_v30 = vadd.f32 1.0, %v1237_v51  ;;  %2206 = vpow2.f32 %v1052_v23  ;;  %v3047_v38 = vadd.f32 %v738_v14, %v2912_v22 }
 0x111   : > { %v3050_v40 = vadd.f32 %v768_v18, %v2930_v32  ;;  %v1240_v41 = vand.u32 2147483647, %v2201_v1  ;;  %2208 = vpow2.f32 %v1072_v25  ;;  %vm3055_vm12 = vcmp.lt.f32.partialorder %v1150_v21, 0.0004427343  ;;  %v501_v18 = vpop.permute.xlu1 %500 }
 0x112   : > { %v1029_v24 = vsub.f32 0.0, %v989_v0  ;;  %v970_v29 = vand.u32 2147483647, %v3047_v38  ;;  %v1149_v50 = vmul.f32 %v2199_v55, %v1148_v27  ;;  %v1239_v32 = vmul.f32 %v2201_v1, %v1238_v30 }
 0x113   : > { %v2203_v33 = vpop.eup %2202  ;;  %v980_v59 = vand.u32 2147483647, %v3050_v40  ;;  %v3061_v2 = vadd.f32 %v822_v48, %v551_v57  ;;  %v858_v47 = vmax.f32 %v2963_v10, 0.0  ;;  %vm1241_vm14 = vcmp.lt.f32.partialorder %v1240_v41, 0.0004427343 }
 0x114   : > { %v2205_v22 = vpop.eup %2204  ;;  %v1146_v31 = vmul.f32 0.6931472, %v2203_v33  ;;  %v1092_v61 = vmul.f32 1.442695, %v1029_v24  ;;  %v1010_v62 = vsub.f32 0.0, %v970_v29  ;;  %v3083_v41 = vadd.f32 %v2980_v56, %v501_v18 }
 0x115   : > { %v1236_v60 = vmul.f32 0.6931472, %v2205_v22  ;;  %v3068_v1 = vpop.f32.mrf.mxu3  ;;  %v1020_v52 = vsub.f32 0.0, %v980_v59  ;;  %v998_v23 = vand.u32 2147483647, %v3061_v2  ;;  %vm899_vm1 = vcmp.ne.f32.partialorder %v2999_v20, %v2999_v20 }
 0x116   : > { %v1152_v3 = vsel %vm3055_vm12, %v1149_v50, %v1146_v31  ;;  %v2207_v4 = vpop.eup %2206  ;;  %2210 = vpow2.f32 %v1092_v61  ;;  %v1054_v14 = vmul.f32 1.442695, %v1010_v62  ;;  %v988_v59 = vand.u32 2147483647, %v3083_v41 }
 0x117   : > { %v1488_v34 = vadd.f32 %v1152_v3, %v848_v16  ;;  %v1242_v55 = vsel %vm1241_vm14, %v1239_v32, %v1236_v60  ;;  %v2209_v53 = vpop.eup %2208  ;;  %v1153_v48 = vadd.f32 1.0, %v2207_v4  ;;  %v1156_v51 = vmul.f32 -0.5, %v2207_v4  ;;  %v496_v16 = vpop.permute.xlu0 %495 }
 0x118   : > { %v1498_v8 = vadd.f32 %v1242_v55, %v858_v47  ;;  %v1243_v21 = vadd.f32 1.0, %v2209_v53  ;;  %v1246_v30 = vmul.f32 -0.5, %v2209_v53  ;;  %v1074_v33 = vmul.f32 1.442695, %v1020_v52 }
 0x119   : > { %v1528_v19 = vsel %vm888_vm13, %v2959_v6, %v1488_v34  ;;  %2212 = vlog2.f32 %v1153_v48  ;;  %v849_v6 = vmax.f32 %v2997_v17, 0.0  ;;  %v1157_v57 = vadd.f32 1.0, %v1156_v51 }
 0x11a   : > { %v3077_v25 = vadd.f32 -0.6931472, %v1528_v19  ;;  %v1538_v27 = vsel %vm898_vm15, %v2963_v10, %v1498_v8  ;;  %2214 = vlog2.f32 %v1243_v21  ;;  %v1159_v24 = vand.u32 2147483647, %v2207_v4 }
 0x11b   : > { %v3080_v0 = vadd.f32 -0.6931472, %v1538_v27  ;;  %2216 = vpow2.f32 %v1054_v14  ;;  %v859_v10 = vmax.f32 %v2999_v20, 0.0  ;;  %v1038_v29 = vsub.f32 0.0, %v998_v23 }
 0x11c   : > { %v2211_v46 = vpop.eup %2210  ;;  %v1247_v22 = vadd.f32 1.0, %v1246_v30  ;;  %2218 = vpow2.f32 %v1074_v33  ;;  %v1249_v50 = vand.u32 2147483647, %v2209_v53  ;;  %v3093_v60 = vadd.f32 %v2961_v9, %v496_v16 }
 0x11d   : > { %v1333_v56 = vadd.f32 1.0, %v2211_v46  ;;  %v1336_v31 = vmul.f32 -0.5, %v2211_v46  ;;  %v1110_v32 = vmul.f32 1.442695, %v1038_v29  ;;  %v1158_v62 = vmul.f32 %v2207_v4, %v1157_v57  ;;  %v3097_v8 = vpop.f32.mrf.mxu3 }
 0x11e   : > { %v869_v3 = vmax.f32 %v3036_v11, 0.0  ;;  %v850_v47 = vmax.f32 %v3047_v38, 0.0  ;;  %v1028_v48 = vsub.f32 0.0, %v988_v59  ;;  %vm1160_vm2 = vcmp.lt.f32.partialorder %v1159_v24, 0.0004427343 }
 0x11f   : > { %v2213_v61 = vpop.eup %2212  ;;  %2220 = vlog2.f32 %v1333_v56  ;;  %v1337_v52 = vadd.f32 1.0, %v1336_v31  ;;  %v1248_v18 = vmul.f32 %v2209_v53, %v1247_v22  ;;  %v987_v9 = vand.u32 2147483647, %v3093_v60  ;;  %v741_v53 = vpop.f32.mrf.mxu0 }
 0x120   : > { %v2215_v34 = vpop.eup %2214  ;;  %v1155_v55 = vmul.f32 0.6931472, %v2213_v61  ;;  %2222 = vpow2.f32 %v1110_v32  ;;  %vm1250_vm3 = vcmp.lt.f32.partialorder %v1249_v50, 0.0004427343  ;;  %vm909_vm4 = vcmp.ne.f32.partialorder %v3036_v11, %v3036_v11 }
 0x121   : > { %v2217_v51 = vpop.eup %2216  ;;  %v1245_v14 = vmul.f32 0.6931472, %v2215_v34  ;;  %v1339_v57 = vand.u32 2147483647, %v2211_v46  ;;  %v860_v33 = vmax.f32 %v3050_v40, 0.0  ;;  %v1338_v29 = vmul.f32 %v2211_v46, %v1337_v52 }
 0x122   : > { %v1161_v19 = vsel %vm1160_vm2, %v1158_v62, %v1155_v55  ;;  %v1162_v4 = vadd.f32 1.0, %v2217_v51  ;;  %v1165_v21 = vmul.f32 -0.5, %v2217_v51  ;;  %v2219_v23 = vpop.eup %2218  ;;  %v1090_v24 = vmul.f32 1.442695, %v1028_v48  ;;  %v771_v62 = vpop.f32.mrf.mxu1 }
 0x123   : > { %v1489_v27 = vadd.f32 %v1161_v19, %v849_v6  ;;  %v1251_v30 = vsel %vm1250_vm3, %v1248_v18, %v1245_v14  ;;  %v1252_v50 = vadd.f32 1.0, %v2219_v23  ;;  %v1027_v32 = vsub.f32 0.0, %v987_v9  ;;  %v3115_v55 = vpop.f32.mrf.mxu2 }
 0x124   : > { %v1499_v16 = vadd.f32 %v1251_v30, %v859_v10  ;;  %2224 = vlog2.f32 %v1162_v4  ;;  %v1166_v31 = vadd.f32 1.0, %v1165_v21  ;;  %v1255_v61 = vmul.f32 -0.5, %v2219_v23 }
 0x125   : > { %v2221_v22 = vpop.eup %2220  ;;  %v1529_v56 = vsel %vm889_vm0, %v2997_v17, %v1489_v27  ;;  %vm1340_vm5 = vcmp.lt.f32.partialorder %v1339_v57, 0.0004427343  ;;  %2226 = vlog2.f32 %v1252_v50  ;;  %v3118_v17 = vadd.f32 %v741_v53, %v2923_v26  ;;  %v831_v57 = vpop.f32.mrf.mxu3 }
 0x126   : > { %v2223_v59 = vpop.eup %2222  ;;  %v3107_v6 = vadd.f32 -0.6931472, %v1529_v56  ;;  %v1539_v46 = vsel %vm899_vm1, %v2999_v20, %v1499_v16  ;;  %v1335_v10 = vmul.f32 0.6931472, %v2221_v22  ;;  %v1168_v48 = vand.u32 2147483647, %v2217_v51  ;;  %v566_v16 = vpop.permute.xlu2 %565 }
 0x127   : > { %v3113_v34 = vadd.f32 -0.6931472, %v1539_v46  ;;  %v1414_v14 = vadd.f32 1.0, %v2223_v59  ;;  %v1417_v18 = vmul.f32 -0.5, %v2223_v59  ;;  %2228 = vpow2.f32 %v1090_v24 }
 0x128   : > { %v1341_v52 = vsel %vm1340_vm5, %v1338_v29, %v1335_v10  ;;  %v1088_v19 = vmul.f32 1.442695, %v1027_v32  ;;  %v3121_v20 = vadd.f32 %v771_v62, %v3006_v43  ;;  %v1167_v21 = vmul.f32 %v2217_v51, %v1166_v31 }
 0x129   : > { %v1509_v9 = vadd.f32 %v1341_v52, %v869_v3  ;;  %v1256_v27 = vadd.f32 1.0, %v1255_v61  ;;  %v1258_v30 = vand.u32 2147483647, %v2219_v23  ;;  %2230 = vlog2.f32 %v1414_v14 }
 0x12a   : > { %v2225_v4 = vpop.eup %2224  ;;  %v1418_v53 = vadd.f32 1.0, %v1417_v18  ;;  %2232 = vpow2.f32 %v1088_v19  ;;  %vm890_vm6 = vcmp.ne.f32.partialorder %v3047_v38, %v3047_v38  ;;  %vm1169_vm7 = vcmp.lt.f32.partialorder %v1168_v48, 0.0004427343 }
 0x12b   : > { %v1549_v26 = vsel %vm909_vm4, %v3036_v11, %v1509_v9  ;;  %v1164_v29 = vmul.f32 0.6931472, %v2225_v4  ;;  %v971_v43 = vand.u32 2147483647, %v3118_v17  ;;  %v2227_v51 = vpop.eup %2226  ;;  %vm900_vm8 = vcmp.ne.f32.partialorder %v3050_v40, %v3050_v40 }
 0x12c   : > { %v3127_v3 = vadd.f32 -0.6931472, %v1549_v26  ;;  %v1420_v22 = vand.u32 2147483647, %v2223_v59  ;;  %v3134_v56 = vadd.f32 %v831_v57, %v566_v16  ;;  %v1254_v31 = vmul.f32 0.6931472, %v2227_v51 }
 0x12d   : > { %v1170_v24 = vsel %vm1169_vm7, %v1167_v21, %v1164_v29  ;;  %v1257_v50 = vmul.f32 %v2219_v23, %v1256_v27  ;;  %v981_v32 = vand.u32 2147483647, %v3121_v20  ;;  %v2229_v46 = vpop.eup %2228  ;;  %vm1259_vm9 = vcmp.lt.f32.partialorder %v1258_v30, 0.0004427343  ;;  %v801_v21 = vpop.f32.mrf.mxu2 }
 0x12e   : > { %v1490_v11 = vadd.f32 %v1170_v24, %v850_v47  ;;  %v878_v10 = vmax.f32 %v3061_v2, 0.0  ;;  %v1419_v61 = vmul.f32 %v2223_v59, %v1418_v53  ;;  %v1011_v62 = vsub.f32 0.0, %v971_v43  ;;  %v516_v27 = vpop.permute.xlu1 %515 }
 0x12f   : > { %v2231_v52 = vpop.eup %2230  ;;  %v1260_v14 = vsel %vm1259_vm9, %v1257_v50, %v1254_v31  ;;  %v1324_v18 = vadd.f32 1.0, %v2229_v46  ;;  %v1001_v47 = vand.u32 2147483647, %v3134_v56  ;;  %v1327_v59 = vmul.f32 -0.5, %v2229_v46 }
 0x130   : > { %v1530_v48 = vsel %vm890_vm6, %v3047_v38, %v1490_v11  ;;  %v2233_v23 = vpop.eup %2232  ;;  %v1500_v19 = vadd.f32 %v1260_v14, %v860_v33  ;;  %v1416_v4 = vmul.f32 0.6931472, %v2231_v52  ;;  %vm1421_vm10 = vcmp.lt.f32.partialorder %v1420_v22, 0.0004427343  ;;  %v511_v22 = vpop.permute.xlu0 %510 }
 0x131   : > { %v3145_v9 = vadd.f32 -0.6931472, %v1530_v48  ;;  %2234 = vlog2.f32 %v1324_v18  ;;  %v1315_v30 = vadd.f32 1.0, %v2233_v23  ;;  %v1021_v38 = vsub.f32 0.0, %v981_v32  ;;  %v744_v14 = vpop.f32.mrf.mxu0 }
 0x132   : > { %v1540_v57 = vsel %vm900_vm8, %v3050_v40, %v1500_v19  ;;  %v1422_v16 = vsel %vm1421_vm10, %v1419_v61, %v1416_v4  ;;  %v1318_v26 = vmul.f32 -0.5, %v2233_v23  ;;  %v3156_v53 = vadd.f32 %v801_v21, %v516_v27  ;;  %v774_v19 = vpop.f32.mrf.mxu1 }
 0x133   : > { %v3154_v29 = vadd.f32 -0.6931472, %v1540_v57  ;;  %v1518_v33 = vadd.f32 %v1422_v16, %v878_v10  ;;  %2236 = vlog2.f32 %v1315_v30  ;;  %vm918_vm11 = vcmp.ne.f32.partialorder %v3061_v2, %v3061_v2 }
 0x134   : > { %v1328_v43 = vadd.f32 1.0, %v1327_v59  ;;  %v1056_v51 = vmul.f32 1.442695, %v1011_v62  ;;  %v1041_v24 = vsub.f32 0.0, %v1001_v47  ;;  %v1330_v11 = vand.u32 2147483647, %v2229_v46 }
 0x135   : > { %v1558_v40 = vsel %vm918_vm11, %v3061_v2, %v1518_v33  ;;  %v1076_v31 = vmul.f32 1.442695, %v1021_v38  ;;  %v1319_v32 = vadd.f32 1.0, %v1318_v26  ;;  %v1321_v52 = vand.u32 2147483647, %v2233_v23 }
 0x136   : > { %v3167_v50 = vadd.f32 -0.6931472, %v1558_v40  ;;  %2238 = vpow2.f32 %v1056_v51  ;;  %v1116_v10 = vmul.f32 1.442695, %v1041_v24  ;;  %v991_v48 = vand.u32 2147483647, %v3156_v53 }
 0x137   : > { %v2235_v61 = vpop.eup %2234  ;;  %2240 = vpow2.f32 %v1076_v31  ;;  %v3171_v62 = vadd.f32 %v3115_v55, %v511_v22  ;;  %v868_v2 = vmax.f32 %v3083_v41, 0.0  ;;  %v1329_v47 = vmul.f32 %v2229_v46, %v1328_v43 }
 0x138   : > { %3912 = vst [vmem:[#allocation8_spill] sm:$0xff] %v3167_v50  ;;  %v1326_v18 = vmul.f32 0.6931472, %v2235_v61  ;;  %2242 = vpow2.f32 %v1116_v10  ;;  %vm908_vm12 = vcmp.ne.f32.partialorder %v3083_v41, %v3083_v41  ;;  %vm1331_vm13 = vcmp.lt.f32.partialorder %v1330_v11, 0.0004427343  ;;  %v804_v61 = vpop.f32.mrf.mxu2 }
 0x139   : > { %v2237_v4 = vpop.eup %2236  ;;  %v1031_v59 = vsub.f32 0.0, %v991_v48  ;;  %v990_v21 = vand.u32 2147483647, %v3171_v62  ;;  %v1320_v30 = vmul.f32 %v2233_v23, %v1319_v32  ;;  %v3181_v38 = vadd.f32 %v744_v14, %v2938_v37 }
 0x13a   : > { %v1332_v55 = vsel %vm1331_vm13, %v1329_v47, %v1326_v18  ;;  %v1317_v27 = vmul.f32 0.6931472, %v2237_v4  ;;  %v867_v57 = vmax.f32 %v3093_v60, 0.0  ;;  %vm1322_vm14 = vcmp.lt.f32.partialorder %v1321_v52, 0.0004427343 }
 0x13b   : > { %v1508_v46 = vadd.f32 %v1332_v55, %v868_v2  ;;  %v3185_v16 = vadd.f32 %v774_v19, %v2994_v12  ;;  %vm907_vm15 = vcmp.ne.f32.partialorder %v3093_v60, %v3093_v60  ;;  %v851_v43 = vmax.f32 %v3118_v17, 0.0 }
 0x13c   : > { %v2239_v26 = vpop.eup %2238  ;;  %v1323_v33 = vsel %vm1322_vm14, %v1320_v30, %v1317_v27  ;;  %v1096_v51 = vmul.f32 1.442695, %v1031_v59  ;;  %v1030_v40 = vsub.f32 0.0, %v990_v21  ;;  %v972_v10 = vand.u32 2147483647, %v3181_v38 }
 0x13d   : > { %v2241_v23 = vpop.eup %2240  ;;  %v1548_v37 = vsel %vm908_vm12, %v3083_v41, %v1508_v46  ;;  %v1507_v24 = vadd.f32 %v1323_v33, %v867_v57  ;;  %v1171_v22 = vadd.f32 1.0, %v2239_v26  ;;  %v1174_v31 = vmul.f32 -0.5, %v2239_v26 }
 0x13e   : > { %v2243_v12 = vpop.eup %2242  ;;  %v3195_v11 = vadd.f32 -0.6931472, %v1548_v37  ;;  %v1261_v32 = vadd.f32 1.0, %v2241_v23  ;;  %v1264_v48 = vmul.f32 -0.5, %v2241_v23  ;;  %v982_v14 = vand.u32 2147483647, %v3185_v16 }
 0x13f   : > { %v1547_v52 = vsel %vm907_vm15, %v3093_v60, %v1507_v24  ;;  %2244 = vlog2.f32 %v1171_v22  ;;  %v861_v41 = vmax.f32 %v3121_v20, 0.0  ;;  %v881_v18 = vmax.f32 %v3134_v56, 0.0 }
 0x140   : > { %v3200_v2 = vadd.f32 -0.6931472, %v1547_v52  ;;  %2246 = vlog2.f32 %v1261_v32  ;;  %v1177_v47 = vand.u32 2147483647, %v2239_v26  ;;  %v1441_v19 = vadd.f32 1.0, %v2243_v12 }
 0x141   : > { %v3206_v59 = vadd.f32 %v804_v61, %v2974_v44  ;;  %vm891_vm0 = vcmp.ne.f32.partialorder %v3118_v17, %v3118_v17  ;;  %v1175_v60 = vadd.f32 1.0, %v1174_v31  ;;  %v1444_v21 = vmul.f32 -0.5, %v2243_v12 }
 0x142   : > { %2248 = vpow2.f32 %v1096_v51  ;;  %v1094_v55 = vmul.f32 1.442695, %v1030_v40  ;;  %vm901_vm1 = vcmp.ne.f32.partialorder %v3121_v20, %v3121_v20  ;;  %v1265_v27 = vadd.f32 1.0, %v1264_v48  ;;  %v3218_v48 = vpop.permute.xlu1 %530 }
 0x143   : > { %2250 = vlog2.f32 %v1441_v19  ;;  %v1012_v30 = vsub.f32 0.0, %v972_v10  ;;  %v1022_v46 = vsub.f32 0.0, %v982_v14  ;;  %v1267_v57 = vand.u32 2147483647, %v2241_v23 }
 0x144   : > { %v1447_v33 = vand.u32 2147483647, %v2243_v12  ;;  %2252 = vpow2.f32 %v1094_v55  ;;  %v1176_v61 = vmul.f32 %v2239_v26, %v1175_v60  ;;  %vm921_vm2 = vcmp.ne.f32.partialorder %v3134_v56, %v3134_v56  ;;  %v747_v26 = vpop.f32.mrf.mxu0 }
 0x145   : > { %v2245_v44 = vpop.eup %2244  ;;  %v1058_v22 = vmul.f32 1.442695, %v1012_v30  ;;  %v1078_v51 = vmul.f32 1.442695, %v1022_v46  ;;  %v1445_v10 = vadd.f32 1.0, %v1444_v21  ;;  %v1266_v19 = vmul.f32 %v2241_v23, %v1265_v27 }
 0x146   : > { %v2247_v40 = vpop.eup %2246  ;;  %v1173_v32 = vmul.f32 0.6931472, %v2245_v44  ;;  %v992_v52 = vand.u32 2147483647, %v3206_v59  ;;  %vm1178_vm3 = vcmp.lt.f32.partialorder %v1177_v47, 0.0004427343  ;;  %vm911_vm6 = vcmp.ne.f32.partialorder %v3156_v53, %v3156_v53 }
 0x147   : > { %v1263_v14 = vmul.f32 0.6931472, %v2247_v40  ;;  %2254 = vpow2.f32 %v1058_v22  ;;  %vm1268_vm4 = vcmp.lt.f32.partialorder %v1267_v57, 0.0004427343  ;;  %vm3220_vm5 = vcmp.lt.f32.partialorder %v1447_v33, 0.0004427343 }
 0x148   : > { %v2249_v55 = vpop.eup %2248  ;;  %v1179_v30 = vsel %vm1178_vm3, %v1176_v61, %v1173_v32  ;;  %2256 = vpow2.f32 %v1078_v51  ;;  %v1446_v40 = vmul.f32 %v2243_v12, %v1445_v10  ;;  %v1032_v23 = vsub.f32 0.0, %v992_v52 }
 0x149   : > { %v2251_v60 = vpop.eup %2250  ;;  %v1491_v44 = vadd.f32 %v1179_v30, %v851_v43  ;;  %v1269_v21 = vsel %vm1268_vm4, %v1266_v19, %v1263_v14  ;;  %v1351_v31 = vadd.f32 1.0, %v2249_v55  ;;  %v1354_v24 = vmul.f32 -0.5, %v2249_v55  ;;  %v777_v19 = vpop.f32.mrf.mxu1 }
 0x14a   : > { %v2253_v37 = vpop.eup %2252  ;;  %v1501_v4 = vadd.f32 %v1269_v21, %v861_v41  ;;  %v1443_v47 = vmul.f32 0.6931472, %v2251_v60  ;;  %v3229_v33 = vadd.f32 %v747_v26, %v2936_v36  ;;  %v1357_v41 = vand.u32 2147483647, %v2249_v55  ;;  %v546_v21 = vpop.permute.xlu1 %545 }
 0x14b   : > { %v1531_v27 = vsel %vm891_vm0, %v3118_v17, %v1491_v44  ;;  %2258 = vlog2.f32 %v1351_v31  ;;  %v1342_v57 = vadd.f32 1.0, %v2253_v37  ;;  %v1355_v31 = vadd.f32 1.0, %v1354_v24  ;;  %v526_v44 = vpop.permute.xlu0 %525 }
 0x14c   : > { %v3231_v22 = vadd.f32 -0.6931472, %v1531_v27  ;;  %v1541_v43 = vsel %vm901_vm1, %v3121_v20, %v1501_v4  ;;  %v1449_v12 = vsel %vm3220_vm5, %v1446_v40, %v1443_v47  ;;  %v1345_v36 = vmul.f32 -0.5, %v2253_v37  ;;  %v807_v20 = vpop.f32.mrf.mxu2 }
 0x14d   : > { %v2255_v51 = vpop.eup %2254  ;;  %v3239_v32 = vadd.f32 -0.6931472, %v1541_v43  ;;  %v1521_v17 = vadd.f32 %v1449_v12, %v881_v18  ;;  %2260 = vlog2.f32 %v1342_v57  ;;  %v1098_v14 = vmul.f32 1.442695, %v1032_v23 }
 0x14e   : > { %v2257_v61 = vpop.eup %2256  ;;  %v1180_v10 = vadd.f32 1.0, %v2255_v51  ;;  %v1183_v52 = vmul.f32 -0.5, %v2255_v51  ;;  %v1348_v30 = vand.u32 2147483647, %v2253_v37  ;;  %vm910_vm7 = vcmp.ne.f32.partialorder %v3171_v62, %v3171_v62 }
 0x14f   : > { %v1561_v4 = vsel %vm921_vm2, %v3134_v56, %v1521_v17  ;;  %v1270_v46 = vadd.f32 1.0, %v2257_v61  ;;  %v1273_v18 = vmul.f32 -0.5, %v2257_v61  ;;  %v1346_v26 = vadd.f32 1.0, %v1345_v36 }
 0x150   : > { %v3247_v24 = vadd.f32 -0.6931472, %v1561_v4  ;;  %2262 = vlog2.f32 %v1180_v10  ;;  %v1186_v60 = vand.u32 2147483647, %v2255_v51  ;;  %v1356_v40 = vmul.f32 %v2249_v55, %v1355_v31 }
 0x151   : > { %v2259_v47 = vpop.eup %2258  ;;  %2264 = vlog2.f32 %v1270_v46  ;;  %v3252_v23 = vadd.f32 %v777_v19, %v2934_v35  ;;  %v3254_v56 = vadd.f32 %v807_v20, %v526_v44  ;;  %v1184_v57 = vadd.f32 1.0, %v1183_v52  ;;  %v3268_v52 = vpop.f32.mrf.mxu3 }
 0x152   : > { %3915 = vst [vmem:[#allocation9_spill] sm:$0xff] %v3247_v24  ;;  %v1353_v27 = vmul.f32 0.6931472, %v2259_v47  ;;  %v1274_v43 = vadd.f32 1.0, %v1273_v18  ;;  %2266 = vpow2.f32 %v1098_v14  ;;  %vm1358_vm8 = vcmp.lt.f32.partialorder %v1357_v41, 0.0004427343 }
 0x153   : > { %v2261_v12 = vpop.eup %2260  ;;  %vm3256_vm9 = vcmp.lt.f32.partialorder %v1348_v30, 0.0004427343  ;;  %v973_v36 = vand.u32 2147483647, %v3229_v33  ;;  %v3262_v55 = vadd.f32 %v2992_v39, %v546_v21  ;;  %v1347_v10 = vmul.f32 %v2253_v37, %v1346_v26 }
 0x154   : > { %v1359_v31 = vsel %vm1358_vm8, %v1356_v40, %v1353_v27  ;;  %v1344_v35 = vmul.f32 0.6931472, %v2261_v12  ;;  %vm3264_vm10 = vcmp.lt.f32.partialorder %v1186_v60, 0.0004427343  ;;  %v3920_v41 = vmax.f32 %v3156_v53, 0.0 }
 0x155   : > { %v1276_v20 = vand.u32 2147483647, %v2257_v61  ;;  %v1013_v4 = vsub.f32 0.0, %v973_v36  ;;  %v983_v30 = vand.u32 2147483647, %v3252_v23  ;;  %v1185_v18 = vmul.f32 %v2255_v51, %v1184_v57 }
 0x156   : > { %v1511_v14 = vadd.f32 %v1359_v31, %v3920_v41  ;;  %v2263_v46 = vpop.eup %2262  ;;  %v1350_v39 = vsel %vm3256_vm9, %v1347_v10, %v1344_v35  ;;  %v1275_v44 = vmul.f32 %v2257_v61, %v1274_v43  ;;  %v993_v37 = vand.u32 2147483647, %v3254_v56 }
 0x157   : > { %v2265_v26 = vpop.eup %2264  ;;  %v3921_v21 = vmax.f32 %v3171_v62, 0.0  ;;  %v1182_v40 = vmul.f32 0.6931472, %v2263_v46  ;;  %v1060_v27 = vmul.f32 1.442695, %v1013_v4  ;;  %v1023_v31 = vsub.f32 0.0, %v983_v30  ;;  %v541_v46 = vpop.permute.xlu0 %540 }
 0x158   : > { %v1551_v60 = vsel %vm911_vm6, %v3156_v53, %v1511_v14  ;;  %v2267_v12 = vpop.eup %2266  ;;  %v1272_v17 = vmul.f32 0.6931472, %v2265_v26  ;;  %v1033_v51 = vsub.f32 0.0, %v993_v37  ;;  %vm1277_vm11 = vcmp.lt.f32.partialorder %v1276_v20, 0.0004427343 }
 0x159   : > { %v1510_v47 = vadd.f32 %v1350_v39, %v3921_v21  ;;  %v3282_v36 = vadd.f32 -0.6931472, %v1551_v60  ;;  %v1188_v57 = vsel %vm3264_vm10, %v1185_v18, %v1182_v40  ;;  %v1360_v53 = vadd.f32 1.0, %v2267_v12  ;;  %v3306_v26 = vpop.f32.mrf.mxu3 }
 0x15a   : > { %v3923_v35 = vmax.f32 %v3181_v38, 0.0  ;;  %v1278_v41 = vsel %vm1277_vm11, %v1275_v44, %v1272_v17  ;;  %v1363_v14 = vmul.f32 -0.5, %v2267_v12  ;;  %vm892_vm12 = vcmp.ne.f32.partialorder %v3181_v38, %v3181_v38 }
 0x15b   : > { %3922 = vst [vmem:[#allocation10_spill] sm:$0xff] %v3282_v36  ;;  %v1550_v61 = vsel %vm910_vm7, %v3171_v62, %v1510_v47  ;;  %v3924_v4 = vmax.f32 %v3185_v16, 0.0  ;;  %2268 = vlog2.f32 %v1360_v53  ;;  %v1080_v62 = vmul.f32 1.442695, %v1023_v31 }
 0x15c   : > { %v3290_v43 = vadd.f32 -0.6931472, %v1550_v61  ;;  %v1492_v10 = vadd.f32 %v1188_v57, %v3923_v35  ;;  %vm902_vm13 = vcmp.ne.f32.partialorder %v3185_v16, %v3185_v16  ;;  %2270 = vpow2.f32 %v1060_v27 }
 0x15d   : > { %v1502_v30 = vadd.f32 %v1278_v41, %v3924_v4  ;;  %v1100_v20 = vmul.f32 1.442695, %v1033_v51  ;;  %2272 = vpow2.f32 %v1080_v62  ;;  %v1364_v37 = vadd.f32 1.0, %v1363_v14  ;;  %v780_v14 = vpop.f32.mrf.mxu1 }
 0x15e   : > { %v1532_v19 = vsel %vm892_vm12, %v3181_v38, %v1492_v10  ;;  %v997_v60 = vand.u32 2147483647, %v3262_v55  ;;  %v750_v38 = vpop.f32.mrf.mxu0  ;;  %v1366_v21 = vand.u32 2147483647, %v2267_v12  ;;  %v3310_v47 = vadd.f32 %v2966_v15, %v541_v46 }
 0x15f   : > { %v3301_v39 = vadd.f32 -0.6931472, %v1532_v19  ;;  %v1542_v18 = vsel %vm902_vm13, %v3185_v16, %v1502_v30  ;;  %2274 = vpow2.f32 %v1100_v20  ;;  %v872_v17 = vmax.f32 %v3206_v59, 0.0  ;;  %v810_v20 = vpop.f32.mrf.mxu2 }
 0x160   : > { %v3304_v44 = vadd.f32 -0.6931472, %v1542_v18  ;;  %v1037_v40 = vsub.f32 0.0, %v997_v60  ;;  %v996_v16 = vand.u32 2147483647, %v3310_v47  ;;  %v3315_v31 = vadd.f32 %v750_v38, %v2928_v28 }
 0x161   : > { %v2269_v27 = vpop.eup %2268  ;;  %vm912_vm14 = vcmp.ne.f32.partialorder %v3206_v59, %v3206_v59  ;;  %v1365_v57 = vmul.f32 %v2267_v12, %v1364_v37  ;;  %v853_v53 = vmax.f32 %v3229_v33, 0.0  ;;  %vm1367_vm15 = vcmp.lt.f32.partialorder %v1366_v21, 0.0004427343 }
 0x162   : > { %v2271_v51 = vpop.eup %2270  ;;  %v1362_v61 = vmul.f32 0.6931472, %v2269_v27  ;;  %v863_v10 = vmax.f32 %v3252_v23, 0.0  ;;  %v1108_v41 = vmul.f32 1.442695, %v1037_v40  ;;  %v1036_v19 = vsub.f32 0.0, %v996_v16 }
 0x163   : > { %v2273_v35 = vpop.eup %2272  ;;  %v1189_v15 = vadd.f32 1.0, %v2271_v51  ;;  %v1192_v62 = vmul.f32 -0.5, %v2271_v51  ;;  %v974_v12 = vand.u32 2147483647, %v3315_v31  ;;  %v873_v37 = vmax.f32 %v3254_v56, 0.0 }
 0x164   : > { %v1368_v30 = vsel %vm1367_vm15, %v1365_v57, %v1362_v61  ;;  %v1279_v28 = vadd.f32 1.0, %v2273_v35  ;;  %v1282_v18 = vmul.f32 -0.5, %v2273_v35  ;;  %v3324_v38 = vadd.f32 %v780_v14, %v3052_v42  ;;  %v840_v42 = vpop.f32.mrf.mxu3 }
 0x165   : > { %v2275_v4 = vpop.eup %2274  ;;  %v1512_v46 = vadd.f32 %v1368_v30, %v872_v17  ;;  %2276 = vlog2.f32 %v1189_v15  ;;  %v1195_v40 = vand.u32 2147483647, %v2271_v51  ;;  %v3331_v17 = vadd.f32 %v810_v20, %v3218_v48  ;;  %v581_v30 = vpop.permute.xlu2 %580 }
 0x166   : > { %2278 = vlog2.f32 %v1279_v28  ;;  %v1369_v60 = vadd.f32 1.0, %v2275_v4  ;;  %v1372_v27 = vmul.f32 -0.5, %v2275_v4  ;;  %vm893_vm0 = vcmp.ne.f32.partialorder %v3229_v33, %v3229_v33 }
 0x167   : > { %v1552_v21 = vsel %vm912_vm14, %v3206_v59, %v1512_v46  ;;  %v1193_v61 = vadd.f32 1.0, %v1192_v62  ;;  %v1106_v57 = vmul.f32 1.442695, %v1036_v19  ;;  %vm903_vm1 = vcmp.ne.f32.partialorder %v3252_v23, %v3252_v23 }
 0x168   : > { %v3333_v16 = vadd.f32 -0.6931472, %v1552_v21  ;;  %2280 = vlog2.f32 %v1369_v60  ;;  %v1283_v15 = vadd.f32 1.0, %v1282_v18  ;;  %v1285_v14 = vand.u32 2147483647, %v2273_v35 }
 0x169   : > { %2282 = vpow2.f32 %v1108_v41  ;;  %v1014_v59 = vsub.f32 0.0, %v974_v12  ;;  %v1373_v28 = vadd.f32 1.0, %v1372_v27  ;;  %v1375_v48 = vand.u32 2147483647, %v2275_v4 }
 0x16a   : > { %3925 = vst [vmem:[#allocation11_spill] sm:$0xff] %v3333_v16  ;;  %2284 = vpow2.f32 %v1106_v57  ;;  %v984_v20 = vand.u32 2147483647, %v3324_v38  ;;  %vm913_vm2 = vcmp.ne.f32.partialorder %v3254_v56, %v3254_v56  ;;  %v3343_v60 = vadd.f32 %v840_v42, %v581_v30 }
 0x16b   : > { %v2277_v46 = vpop.eup %2276  ;;  %v1062_v19 = vmul.f32 1.442695, %v1014_v59  ;;  %v1194_v24 = vmul.f32 %v2271_v51, %v1193_v61  ;;  %vm1196_vm3 = vcmp.lt.f32.partialorder %v1195_v40, 0.0004427343  ;;  %v994_v41 = vand.u32 2147483647, %v3331_v17 }
 0x16c   : > { %v2279_v21 = vpop.eup %2278  ;;  %v1191_v18 = vmul.f32 0.6931472, %v2277_v46  ;;  %v1284_v27 = vmul.f32 %v2273_v35, %v1283_v15  ;;  %vm1286_vm4 = vcmp.lt.f32.partialorder %v1285_v14, 0.0004427343  ;;  %v1374_v36 = vmul.f32 %v2275_v4, %v1373_v28 }
 0x16d   : > { %v1281_v12 = vmul.f32 0.6931472, %v2279_v21  ;;  %2286 = vpow2.f32 %v1062_v19  ;;  %vm3346_vm5 = vcmp.lt.f32.partialorder %v1375_v48, 0.0004427343  ;;  %v1024_v59 = vsub.f32 0.0, %v984_v20  ;;  %v556_v20 = vpop.permute.xlu0 %555 }
 0x16e   : > { %v2281_v57 = vpop.eup %2280  ;;  %v1197_v50 = vsel %vm1196_vm3, %v1194_v24, %v1191_v18  ;;  %v1004_v51 = vand.u32 2147483647, %v3343_v60  ;;  %v1034_v15 = vsub.f32 0.0, %v994_v41  ;;  %vm917_vm6 = vcmp.ne.f32.partialorder %v3262_v55, %v3262_v55 }
 0x16f   : > { %v2283_v42 = vpop.eup %2282  ;;  %v1493_v30 = vadd.f32 %v1197_v50, %v853_v53  ;;  %v1287_v62 = vsel %vm1286_vm4, %v1284_v27, %v1281_v12  ;;  %v1371_v46 = vmul.f32 0.6931472, %v2281_v57  ;;  %v561_v50 = vpop.permute.xlu1 %560  ;;  %v3377_v27 = vadd.f32 %v3068_v1, %v556_v20 }
 0x170   : > { %v2285_v40 = vpop.eup %2284  ;;  %v1503_v61 = vadd.f32 %v1287_v62, %v863_v10  ;;  %v1405_v21 = vadd.f32 1.0, %v2283_v42  ;;  %v1408_v35 = vmul.f32 -0.5, %v2283_v42  ;;  %v1044_v16 = vsub.f32 0.0, %v1004_v51 }
 0x171   : > { %v1533_v24 = vsel %vm893_vm0, %v3229_v33, %v1493_v30  ;;  %v1377_v4 = vsel %vm3346_vm5, %v1374_v36, %v1371_v46  ;;  %v1396_v14 = vadd.f32 1.0, %v2285_v40  ;;  %v1399_v28 = vmul.f32 -0.5, %v2285_v40 }
 0x172   : > { %v3357_v53 = vadd.f32 -0.6931472, %v1533_v24  ;;  %v1543_v10 = vsel %vm903_vm1, %v3252_v23, %v1503_v61  ;;  %v1513_v48 = vadd.f32 %v1377_v4, %v873_v37  ;;  %2288 = vlog2.f32 %v1405_v21 }
 0x173   : > { %v2287_v62 = vpop.eup %2286  ;;  %v3363_v19 = vadd.f32 -0.6931472, %v1543_v10  ;;  %2290 = vlog2.f32 %v1396_v14  ;;  %v1082_v33 = vmul.f32 1.442695, %v1024_v59  ;;  %v1409_v18 = vadd.f32 1.0, %v1408_v35 }
 0x174   : > { %v1553_v36 = vsel %vm913_vm2, %v3254_v56, %v1513_v48  ;;  %v1198_v41 = vadd.f32 1.0, %v2287_v62  ;;  %v3370_v12 = vadd.f32 %v3097_v8, %v561_v50  ;;  %v1201_v37 = vmul.f32 -0.5, %v2287_v62 }
 0x175   : > { %v3372_v23 = vadd.f32 -0.6931472, %v1553_v36  ;;  %v1411_v57 = vand.u32 2147483647, %v2283_v42  ;;  %v1400_v59 = vadd.f32 1.0, %v1399_v28  ;;  %v876_v56 = vmax.f32 %v3310_v47, 0.0 }
 0x176   : > { %2292 = vlog2.f32 %v1198_v41  ;;  %v1102_v30 = vmul.f32 1.442695, %v1034_v15  ;;  %v1402_v46 = vand.u32 2147483647, %v2285_v40  ;;  %v1122_v51 = vmul.f32 1.442695, %v1044_v16 }
 0x177   : > { %2294 = vpow2.f32 %v1082_v33  ;;  %v1410_v61 = vmul.f32 %v2283_v42, %v1409_v18  ;;  %vm916_vm7 = vcmp.ne.f32.partialorder %v3310_v47, %v3310_v47  ;;  %v1000_v21 = vand.u32 2147483647, %v3370_v12 }
 0x178   : > { %v2289_v8 = vpop.eup %2288  ;;  %2296 = vpow2.f32 %v1102_v30  ;;  %v1202_v24 = vadd.f32 1.0, %v1201_v37  ;;  %v1204_v4 = vand.u32 2147483647, %v2287_v62  ;;  %vm1412_vm8 = vcmp.lt.f32.partialorder %v1411_v57, 0.0004427343 }
 0x179   : > { %v2291_v35 = vpop.eup %2290  ;;  %v1407_v1 = vmul.f32 0.6931472, %v2289_v8  ;;  %2298 = vpow2.f32 %v1122_v51  ;;  %v1401_v14 = vmul.f32 %v2285_v40, %v1400_v59  ;;  %v1040_v28 = vsub.f32 0.0, %v1000_v21  ;;  %v753_v8 = vpop.f32.mrf.mxu0 }
 0x17a   : > { %v1398_v15 = vmul.f32 0.6931472, %v2291_v35  ;;  %vm1403_vm9 = vcmp.lt.f32.partialorder %v1402_v46, 0.0004427343  ;;  %v854_v10 = vmax.f32 %v3315_v31, 0.0  ;;  %vm894_vm10 = vcmp.ne.f32.partialorder %v3315_v31, %v3315_v31 }
 0x17b   : > { %v1413_v50 = vsel %vm1412_vm8, %v1410_v61, %v1407_v1  ;;  %v3928_v48 = vmax.f32 %v3262_v55, 0.0  ;;  %v999_v36 = vand.u32 2147483647, %v3377_v27  ;;  %v1203_v37 = vmul.f32 %v2287_v62, %v1202_v24  ;;  %v783_v1 = vpop.f32.mrf.mxu1 }
 0x17c   : > { %v2293_v42 = vpop.eup %2292  ;;  %v1404_v33 = vsel %vm1403_vm9, %v1401_v14, %v1398_v15  ;;  %vm1205_vm11 = vcmp.lt.f32.partialorder %v1204_v4, 0.0004427343  ;;  %v1114_v51 = vmul.f32 1.442695, %v1040_v28  ;;  %v874_v15 = vmax.f32 %v3331_v17, 0.0 }
 0x17d   : > { %v1517_v20 = vadd.f32 %v1413_v50, %v3928_v48  ;;  %v2295_v18 = vpop.eup %2294  ;;  %v1516_v41 = vadd.f32 %v1404_v33, %v876_v56  ;;  %v1200_v40 = vmul.f32 0.6931472, %v2293_v42  ;;  %v3404_v28 = vadd.f32 %v753_v8, %v2947_v49  ;;  %v813_v49 = vpop.f32.mrf.mxu2 }
 0x17e   : > { %v2297_v57 = vpop.eup %2296  ;;  %v1288_v30 = vadd.f32 1.0, %v2295_v18  ;;  %v1291_v46 = vmul.f32 -0.5, %v2295_v18  ;;  %v3411_v48 = vadd.f32 %v783_v1, %v3038_v13  ;;  %vm904_vm12 = vcmp.ne.f32.partialorder %v3324_v38, %v3324_v38 }
 0x17f   : > { %v1557_v59 = vsel %vm917_vm6, %v3262_v55, %v1517_v20  ;;  %v2299_v61 = vpop.eup %2298  ;;  %v1556_v56 = vsel %vm916_vm7, %v3310_v47, %v1516_v41  ;;  %v1206_v62 = vsel %vm1205_vm11, %v1203_v37, %v1200_v40  ;;  %v1378_v35 = vadd.f32 1.0, %v2297_v57 }
 0x180   : > { %v3394_v21 = vadd.f32 -0.6931472, %v1557_v59  ;;  %v3400_v24 = vadd.f32 -0.6931472, %v1556_v56  ;;  %v1494_v4 = vadd.f32 %v1206_v62, %v854_v10  ;;  %2300 = vlog2.f32 %v1288_v30 }
 0x181   : > { %v1039_v55 = vsub.f32 0.0, %v999_v36  ;;  %2302 = vlog2.f32 %v1378_v35  ;;  %v1381_v14 = vmul.f32 -0.5, %v2297_v57  ;;  %v1468_v50 = vadd.f32 1.0, %v2299_v61  ;;  %v576_v36 = vpop.permute.xlu1 %575 }
 0x182   : > { %3929 = vst [vmem:[#allocation12_spill] sm:$0xff] %v3394_v21  ;;  %v1534_v47 = vsel %vm894_vm10, %v3315_v31, %v1494_v4  ;;  %v1471_v42 = vmul.f32 -0.5, %v2299_v61  ;;  %v1292_v20 = vadd.f32 1.0, %v1291_v46  ;;  %v1294_v33 = vand.u32 2147483647, %v2295_v18 }
 0x183   : > { %v3413_v10 = vadd.f32 -0.6931472, %v1534_v47  ;;  %2304 = vpow2.f32 %v1114_v51  ;;  %vm914_vm13 = vcmp.ne.f32.partialorder %v3331_v17, %v3331_v17  ;;  %v1382_v41 = vadd.f32 1.0, %v1381_v14 }
 0x184   : > { %v1384_v31 = vand.u32 2147483647, %v2297_v57  ;;  %2306 = vlog2.f32 %v1468_v50  ;;  %v1112_v40 = vmul.f32 1.442695, %v1039_v55  ;;  %v884_v13 = vmax.f32 %v3343_v60, 0.0  ;;  %v571_v55 = vpop.permute.xlu0 %570 }
 0x185   : > { %v1472_v37 = vadd.f32 1.0, %v1471_v42  ;;  %v1474_v59 = vand.u32 2147483647, %v2299_v61  ;;  %v975_v30 = vand.u32 2147483647, %v3404_v28  ;;  %v3423_v51 = vadd.f32 %v813_v49, %v3009_v45 }
 0x186   : > { %v2301_v8 = vpop.eup %2300  ;;  %2308 = vpow2.f32 %v1112_v40  ;;  %v985_v46 = vand.u32 2147483647, %v3411_v48  ;;  %v3426_v56 = vadd.f32 %v3306_v26, %v576_v36  ;;  %v1293_v1 = vmul.f32 %v2295_v18, %v1292_v20 }
 0x187   : > { %v2303_v62 = vpop.eup %2302  ;;  %v1290_v35 = vmul.f32 0.6931472, %v2301_v8  ;;  %vm1295_vm14 = vcmp.lt.f32.partialorder %v1294_v33, 0.0004427343  ;;  %v1015_v4 = vsub.f32 0.0, %v975_v30  ;;  %v1383_v47 = vmul.f32 %v2297_v57, %v1382_v41 }
 0x188   : > { %v1380_v14 = vmul.f32 0.6931472, %v2303_v62  ;;  %vm1385_vm15 = vcmp.lt.f32.partialorder %v1384_v31, 0.0004427343  ;;  %v1025_v50 = vsub.f32 0.0, %v985_v46  ;;  %v1473_v16 = vmul.f32 %v2299_v61, %v1472_v37 }
 0x189   : > { %v2305_v42 = vpop.eup %2304  ;;  %v1296_v40 = vsel %vm1295_vm14, %v1293_v1, %v1290_v35  ;;  %vm3428_vm0 = vcmp.lt.f32.partialorder %v1474_v59, 0.0004427343  ;;  %v1064_v45 = vmul.f32 1.442695, %v1015_v4  ;;  %v3932_v49 = vmax.f32 %v3324_v38, 0.0 }
 0x18a   : > { %v2307_v26 = vpop.eup %2306  ;;  %v1386_v18 = vsel %vm1385_vm15, %v1383_v47, %v1380_v14  ;;  %v1432_v20 = vadd.f32 1.0, %v2305_v42  ;;  %v995_v33 = vand.u32 2147483647, %v3423_v51  ;;  %v1435_v41 = vmul.f32 -0.5, %v2305_v42 }
 0x18b   : > { %v1504_v36 = vadd.f32 %v1296_v40, %v3932_v49  ;;  %v1514_v30 = vadd.f32 %v1386_v18, %v874_v15  ;;  %v1470_v57 = vmul.f32 0.6931472, %v2307_v26  ;;  %2310 = vpow2.f32 %v1064_v45  ;;  %v843_v49 = vpop.f32.mrf.mxu3 }
 0x18c   : > { %v2309_v31 = vpop.eup %2308  ;;  %2312 = vlog2.f32 %v1432_v20  ;;  %v1084_v37 = vmul.f32 1.442695, %v1025_v50  ;;  %v1003_v59 = vand.u32 2147483647, %v3426_v56  ;;  %vm924_vm1 = vcmp.ne.f32.partialorder %v3343_v60, %v3343_v60 }
 0x18d   : > { %v1544_v61 = vsel %vm904_vm12, %v3324_v38, %v1504_v36  ;;  %v1554_v15 = vsel %vm914_vm13, %v3331_v17, %v1514_v30  ;;  %v1476_v46 = vsel %vm3428_vm0, %v1473_v16, %v1470_v57  ;;  %v880_v35 = vmax.f32 %v3370_v12, 0.0 }
 0x18e   : > { %v3440_v8 = vadd.f32 -0.6931472, %v1544_v61  ;;  %v3450_v62 = vadd.f32 -0.6931472, %v1554_v15  ;;  %v1524_v38 = vadd.f32 %v1476_v46, %v884_v13  ;;  %v1423_v1 = vadd.f32 1.0, %v2309_v31  ;;  %v586_v13 = vpop.permute.xlu0 %585 }
 0x18f   : > { %v1436_v4 = vadd.f32 1.0, %v1435_v41  ;;  %v1426_v14 = vmul.f32 -0.5, %v2309_v31  ;;  %2314 = vpow2.f32 %v1084_v37  ;;  %v1035_v47 = vsub.f32 0.0, %v995_v33 }
 0x190   : > { %v1564_v50 = vsel %vm924_vm1, %v3343_v60, %v1524_v38  ;;  %v1438_v40 = vand.u32 2147483647, %v2305_v42  ;;  %2316 = vlog2.f32 %v1423_v1  ;;  %v1043_v17 = vsub.f32 0.0, %v1003_v59 }
 0x191   : > { %v2311_v45 = vpop.eup %2310  ;;  %v3454_v26 = vadd.f32 -0.6931472, %v1564_v50  ;;  %vm920_vm2 = vcmp.ne.f32.partialorder %v3370_v12, %v3370_v12  ;;  %v879_v16 = vmax.f32 %v3377_v27, 0.0  ;;  %v3460_v21 = vadd.f32 %v3268_v52, %v571_v55 }
 0x192   : > { %v2313_v36 = vpop.eup %2312  ;;  %v1427_v18 = vadd.f32 1.0, %v1426_v14  ;;  %v1207_v20 = vadd.f32 1.0, %v2311_v45  ;;  %v1210_v60 = vmul.f32 -0.5, %v2311_v45  ;;  %v1104_v33 = vmul.f32 1.442695, %v1035_v47 }
 0x193   : > { %v1434_v30 = vmul.f32 0.6931472, %v2313_v36  ;;  %v1437_v57 = vmul.f32 %v2305_v42, %v1436_v4  ;;  %vm919_vm3 = vcmp.ne.f32.partialorder %v3377_v27, %v3377_v27  ;;  %v1120_v41 = vmul.f32 1.442695, %v1043_v17 }
 0x194   : > { %vm1439_vm4 = vcmp.lt.f32.partialorder %v1438_v40, 0.0004427343  ;;  %v1429_v61 = vand.u32 2147483647, %v2309_v31  ;;  %2318 = vlog2.f32 %v1207_v20  ;;  %v3464_v37 = vadd.f32 %v843_v49, %v586_v13 }
 0x195   : > { %v2315_v52 = vpop.eup %2314  ;;  %v1440_v55 = vsel %vm1439_vm4, %v1437_v57, %v1434_v30  ;;  %v1213_v59 = vand.u32 2147483647, %v2311_v45  ;;  %2320 = vpow2.f32 %v1104_v33  ;;  %v1002_v15 = vand.u32 2147483647, %v3460_v21 }
 0x196   : > { %v2317_v46 = vpop.eup %2316  ;;  %v1520_v38 = vadd.f32 %v1440_v55, %v880_v35  ;;  %v1428_v1 = vmul.f32 %v2309_v31, %v1427_v18  ;;  %v1211_v42 = vadd.f32 1.0, %v1210_v60  ;;  %v1297_v4 = vadd.f32 1.0, %v2315_v52 }
 0x197   : > { %v1425_v14 = vmul.f32 0.6931472, %v2317_v46  ;;  %v1300_v47 = vmul.f32 -0.5, %v2315_v52  ;;  %2322 = vpow2.f32 %v1120_v41  ;;  %v1042_v50 = vsub.f32 0.0, %v1002_v15 }
 0x198   : > { %v1560_v40 = vsel %vm920_vm2, %v3370_v12, %v1520_v38  ;;  %vm1430_vm5 = vcmp.lt.f32.partialorder %v1429_v61, 0.0004427343  ;;  %v855_v17 = vmax.f32 %v3404_v28, 0.0  ;;  %2324 = vlog2.f32 %v1297_v4 }
 0x199   : > { %v3473_v13 = vadd.f32 -0.6931472, %v1560_v40  ;;  %v1431_v35 = vsel %vm1430_vm5, %v1428_v1, %v1425_v14  ;;  %vm3475_vm6 = vcmp.lt.f32.partialorder %v1213_v59, 0.0004427343  ;;  %v1118_v49 = vmul.f32 1.442695, %v1042_v50 }
 0x19a   : > { %v2319_v36 = vpop.eup %2318  ;;  %v1519_v18 = vadd.f32 %v1431_v35, %v879_v16  ;;  %v1212_v20 = vmul.f32 %v2311_v45, %v1211_v42  ;;  %v1005_v60 = vand.u32 2147483647, %v3464_v37  ;;  %v1609_v33 = vlaneseq }
 0x19b   : > { %v2321_v12 = vpop.eup %2320  ;;  %v1209_v30 = vmul.f32 0.6931472, %v2319_v36  ;;  %v1301_v57 = vadd.f32 1.0, %v1300_v47  ;;  %v1303_v41 = vand.u32 2147483647, %v2315_v52  ;;  %2326 = vpow2.f32 %v1118_v49 }
 0x19c   : > { %v1559_v61 = vsel %vm919_vm3, %v3377_v27, %v1519_v18  ;;  %v1387_v55 = vadd.f32 1.0, %v2321_v12  ;;  %v1390_v59 = vmul.f32 -0.5, %v2321_v12  ;;  %v1611_v15 = vstv %s2090_s29 }
 0x19d   : > { %v2323_v46 = vpop.eup %2322  ;;  %v3484_v38 = vadd.f32 -0.6931472, %v1559_v61  ;;  %v1215_v45 = vsel %vm3475_vm6, %v1212_v20, %v1209_v30  ;;  %v1045_v16 = vsub.f32 0.0, %v1005_v60  ;;  %v3488_v1 = vand.u32 127, %v1609_v33 }
 0x19e   : > { %v2325_v42 = vpop.eup %2324  ;;  %vm895_vm7 = vcmp.ne.f32.partialorder %v3404_v28, %v3404_v28  ;;  %v1495_v4 = vadd.f32 %v1215_v45, %v855_v17  ;;  %v865_v14 = vmax.f32 %v3411_v48, 0.0  ;;  %2328 = vlog2.f32 %v1387_v55 }
 0x19f   : > { %v1299_v27 = vmul.f32 0.6931472, %v2325_v42  ;;  %v1302_v47 = vmul.f32 %v2315_v52, %v1301_v57  ;;  %vm1304_vm8 = vcmp.lt.f32.partialorder %v1303_v41, 0.0004427343  ;;  %v1459_v50 = vadd.f32 1.0, %v2323_v46 }
 0x1a0   : > { %v1535_v40 = vsel %vm895_vm7, %v3404_v28, %v1495_v4  ;;  %v1462_v35 = vmul.f32 -0.5, %v2323_v46  ;;  %v1124_v31 = vmul.f32 1.442695, %v1045_v16  ;;  %v3495_v49 = vadd.s32 %v1611_v15, %v3488_v1 }
 0x1a1   : > { %v2327_v36 = vpop.eup %2326  ;;  %v3497_v18 = vadd.f32 -0.6931472, %v1535_v40  ;;  %v1305_v20 = vsel %vm1304_vm8, %v1302_v47, %v1299_v27  ;;  %v1391_v60 = vadd.f32 1.0, %v1390_v59  ;;  %2330 = vlog2.f32 %v1459_v50 }
 0x1a2   : > { %v1505_v17 = vadd.f32 %v1305_v20, %v865_v14  ;;  %v1393_v33 = vand.u32 2147483647, %v2321_v12  ;;  %v1450_v30 = vadd.f32 1.0, %v2327_v36  ;;  %v1453_v61 = vmul.f32 -0.5, %v2327_v36 }
 0x1a3   : > { %vm905_vm9 = vcmp.ne.f32.partialorder %v3411_v48, %v3411_v48  ;;  %2332 = vpow2.f32 %v1124_v31  ;;  %v1463_v57 = vadd.f32 1.0, %v1462_v35  ;;  %v1392_v15 = vmul.f32 %v2321_v12, %v1391_v60 }
 0x1a4   : > { %v2329_v28 = vpop.eup %2328  ;;  %v1545_v52 = vsel %vm905_vm9, %v3411_v48, %v1505_v17  ;;  %2334 = vlog2.f32 %v1450_v30  ;;  %v1465_v45 = vand.u32 2147483647, %v2323_v46  ;;  %v875_v59 = vmax.f32 %v3423_v51, 0.0 }
 0x1a5   : > { %v3502_v41 = vadd.f32 -0.6931472, %v1545_v52  ;;  %v1389_v55 = vmul.f32 0.6931472, %v2329_v28  ;;  %vm1394_vm10 = vcmp.lt.f32.partialorder %v1393_v33, 0.0004427343  ;;  %v1464_v47 = vmul.f32 %v2323_v46, %v1463_v57 }
 0x1a6   : > { %v1454_v16 = vadd.f32 1.0, %v1453_v61  ;;  %v1456_v50 = vand.u32 2147483647, %v2327_v36  ;;  %vm915_vm11 = vcmp.ne.f32.partialorder %v3423_v51, %v3423_v51  ;;  %v883_v48 = vmax.f32 %v3426_v56, 0.0 }
 0x1a7   : > { %v2331_v42 = vpop.eup %2330  ;;  %v1395_v4 = vsel %vm1394_vm10, %v1392_v15, %v1389_v55  ;;  %vm1466_vm12 = vcmp.lt.f32.partialorder %v1465_v45, 0.0004427343  ;;  %vm923_vm13 = vcmp.ne.f32.partialorder %v3426_v56, %v3426_v56  ;;  %v882_v46 = vmax.f32 %v3460_v21, 0.0 }
 0x1a8   : > { %v1515_v14 = vadd.f32 %v1395_v4, %v875_v59  ;;  %v1461_v27 = vmul.f32 0.6931472, %v2331_v42  ;;  %v1455_v20 = vmul.f32 %v2327_v36, %v1454_v16  ;;  %vm1457_vm14 = vcmp.lt.f32.partialorder %v1456_v50, 0.0004427343 }
 0x1a9   : > { %v2333_v40 = vpop.eup %2332  ;;  %vm922_vm15 = vcmp.ne.f32.partialorder %v3460_v21, %v3460_v21  ;;  %v885_v4 = vmax.f32 %v3464_v37, 0.0  ;;  %vm925_vm1 = vcmp.ne.f32.partialorder %v3464_v37, %v3464_v37 }
 0x1aa   : > { %v2335_v35 = vpop.eup %2334  ;;  %v1555_v12 = vsel %vm915_vm11, %v3423_v51, %v1515_v14  ;;  %v1467_v31 = vsel %vm1466_vm12, %v1464_v47, %v1461_v27  ;;  %v1477_v60 = vadd.f32 1.0, %v2333_v40  ;;  %v1480_v61 = vmul.f32 -0.5, %v2333_v40 }
 0x1ab   : > { %v3509_v17 = vadd.f32 -0.6931472, %v1555_v12  ;;  %v1523_v33 = vadd.f32 %v1467_v31, %v883_v48  ;;  %v1452_v30 = vmul.f32 0.6931472, %v2335_v35  ;;  %v1483_v15 = vand.u32 2147483647, %v2333_v40 }
 0x1ac   : > { %2336 = vlog2.f32 %v1477_v60  ;;  %v1481_v36 = vadd.f32 1.0, %v1480_v61 }
 0x1ad   : > { %v1563_v28 = vsel %vm923_vm13, %v3426_v56, %v1523_v33  ;;  %v1458_v52 = vsel %vm1457_vm14, %v1455_v20, %v1452_v30  ;;  %vm1484_vm0 = vcmp.lt.f32.partialorder %v1483_v15, 0.0004427343 }
 0x1ae   : > { %v3515_v57 = vadd.f32 -0.6931472, %v1563_v28  ;;  %v1522_v51 = vadd.f32 %v1458_v52, %v882_v46  ;;  %v1482_v42 = vmul.f32 %v2333_v40, %v1481_v36 }
 0x1b0   : > { %v1562_v55 = vsel %vm922_vm15, %v3460_v21, %v1522_v51 }
 0x1b1   : > { %v3520_v45 = vadd.f32 -0.6931472, %v1562_v55 }
 0x1b2   : > { %v2337_v59 = vpop.eup %2336 }
 0x1b3   : > { %v1479_v16 = vmul.f32 0.6931472, %v2337_v59 }
 0x1b5   : > { %v1485_v56 = vsel %vm1484_vm0, %v1482_v42, %v1479_v16  ;;  %1962 = sbr.rel (%p1961_p12) target bundleno = 677 (0x2a5), region = 110 }
 0x1b6   : > { %v1525_v14 = vadd.f32 %v1485_v56, %v885_v4 }
 0x1b8   : > { %v1565_v27 = vsel %vm925_vm1, %v3464_v37, %v1525_v14 }
 0x1b9   : > { %v3526_v47 = vadd.f32 -0.6931472, %v1565_v27 }
 0x1ba LB: >> { %s1622_s30 = sld [smem:[#allocation3 + %s2438_s1]]  ;;  %s3539_s7 = sadd.s32 1, %s2438_s1   ;;  %vm1876_vm6 = vcmask 31744   ;;  %s2438_s1 = sphi %s3178_s1, %s3944_s1  }
 0x1bb   : >> { %s1624_s8 = sld [smem:[#allocation3 + %s3539_s7]]  ;;  %p1618_p13 = scmp.ge.s32.totalorder %s3539_s7, %s1615_s28 }
 0x1c0   : >> { %v1625_v21 = vstv %s1622_s30 }
 0x1c1   : >> { %vm1626_vm2 = vcmp.ge.s32.totalorder %v3495_v49, %v1625_v21  ;;  %v1627_v37 = vstv %s1624_s8 }
 0x1c2   : >> { %vm1628_vm3 = vcmp.lt.s32.totalorder %v3495_v49, %v1627_v37  ;;  %v3937_v37 = vld [vmem:[#allocation11_spill] sm:$0xff] }
 0x1c3   : >> { %vm3544_vm4 = vmand %vm1626_vm2, %vm1628_vm3 }
 0x1c4   : >> { %v1632_v40 = vsel %vm3544_vm4, %v2986_v63, 0.0  ;;  %v1636_v48 = vsel %vm3544_vm4, %v3145_v9, 0.0  ;;  %v1634_v35 = vsel %vm3544_vm4, %v3077_v25, 0.0  ;;  %v1633_v12 = vsel %vm3544_vm4, %v3031_v7, 0.0 }
 0x1c5   : >> { %1672 = vadd.xlane.f32.xlu0 %v1632_v40  ;;  %1680 = vadd.xlane.f32.xlu2 %v1636_v48  ;;  %v1637_v31 = vsel %vm3544_vm4, %v3231_v22, 0.0  ;;  %v1635_v20 = vsel %vm3544_vm4, %v3107_v6, 0.0  ;;  %v1638_v60 = vsel %vm3544_vm4, %v3301_v39, 0.0  ;;  %v1640_v33 = vsel %vm3544_vm4, %v3413_v10, 0.0  ;;  %v3938_v48 = vld [vmem:[#allocation10_spill] sm:$0xff] }
 0x1c6   : >> { %1676 = vadd.xlane.f32.xlu1 %v1634_v35  ;;  %v1639_v30 = vsel %vm3544_vm4, %v3357_v53, 0.0  ;;  %v1641_v61 = vsel %vm3544_vm4, %v3497_v18, 0.0  ;;  %v1643_v46 = vsel %vm3544_vm4, %v3043_v54, 0.0  ;;  %v1642_v28 = vsel %vm3544_vm4, %v3023_v5, 0.0 }
 0x1c7   : >> { %v1644_v52 = vsel %vm3544_vm4, %v3080_v0, 0.0  ;;  %v1646_v51 = vsel %vm3544_vm4, %v3154_v29, 0.0  ;;  %v1645_v36 = vsel %vm3544_vm4, %v3113_v34, 0.0  ;;  %v1647_v55 = vsel %vm3544_vm4, %v3239_v32, 0.0 }
 0x1c8   : >> { %v1649_v15 = vsel %vm3544_vm4, %v3363_v19, 0.0  ;;  %v1648_v59 = vsel %vm3544_vm4, %v3304_v44, 0.0  ;;  %v1650_v16 = vsel %vm3544_vm4, %v3440_v8, 0.0  ;;  %v1652_v42 = vsel %vm3544_vm4, %v3017_v58, 0.0 }
 0x1c9   : >> { %v1651_v4 = vsel %vm3544_vm4, %v3502_v41, 0.0  ;;  %v1653_v56 = vsel %vm3544_vm4, %v3200_v2, 0.0  ;;  %v1655_v14 = vsel %vm3544_vm4, %v3127_v3, 0.0  ;;  %v1654_v27 = vsel %vm3544_vm4, %v3195_v11, 0.0 }
 0x1ca   : >> { %v1656_v21 = vsel %vm3544_vm4, %v3290_v43, 0.0  ;;  %v1658_v40 = vsel %vm3544_vm4, %v3937_v37, 0.0  ;;  %v1657_v35 = vsel %vm3544_vm4, %v3938_v48, 0.0  ;;  %v1754_v37 = vld [vmem:[%s2555_s17 + $0x10] sm:$0xff] }
 0x1cd   : >> { %1674 = vadd.xlane.f32.xlu0 %v1633_v12  ;;  %1682 = vadd.xlane.f32.xlu2 %v1637_v31  ;;  %v1659_v12 = vsel %vm3544_vm4, %v3372_v23, 0.0  ;;  %v1661_v31 = vsel %vm3544_vm4, %v3509_v17, 0.0 }
 0x1ce   : >> { %1678 = vadd.xlane.f32.xlu1 %v1635_v20  ;;  %v1660_v20 = vsel %vm3544_vm4, %v3450_v62, 0.0 }
 0x1d5   : >> { %1684 = vadd.xlane.f32.xlu0 %v1638_v60  ;;  %1688 = vadd.xlane.f32.xlu2 %v1640_v33  ;;  %v1662_v60 = vsel %vm3544_vm4, %v3400_v24, 0.0  ;;  %v3939_v33 = vld [vmem:[#allocation8_spill] sm:$0xff] }
 0x1d6   : >> { %1686 = vadd.xlane.f32.xlu1 %v1639_v30  ;;  %v1664_v30 = vsel %vm3544_vm4, %v3939_v33, 0.0  ;;  %v1757_v33 = vld [vmem:[%s2555_s17 + $0x28] sm:$0xff] }
 0x1dd   : >> { %1690 = vadd.xlane.f32.xlu0 %v1641_v61  ;;  %1694 = vadd.xlane.f32.xlu2 %v1643_v46  ;;  %v3940_v61 = vld [vmem:[#allocation12_spill] sm:$0xff] }
 0x1de   : >> { %1692 = vadd.xlane.f32.xlu1 %v1642_v28  ;;  %v1663_v46 = vsel %vm3544_vm4, %v3940_v61, 0.0  ;;  %v1665_v28 = vsel %vm3544_vm4, %v3484_v38, 0.0 }
 0x1e5   : >> { %1696 = vadd.xlane.f32.xlu0 %v1644_v52  ;;  %1700 = vadd.xlane.f32.xlu2 %v1646_v51  ;;  %v3941_v52 = vld [vmem:[#allocation9_spill] sm:$0xff] }
 0x1e6   : >> { %1698 = vadd.xlane.f32.xlu1 %v1645_v36  ;;  %v1667_v51 = vsel %vm3544_vm4, %v3941_v52, 0.0  ;;  %v1666_v36 = vsel %vm3544_vm4, %v3473_v13, 0.0 }
 0x1ed   : >> { %1702 = vadd.xlane.f32.xlu0 %v1647_v55  ;;  %1706 = vadd.xlane.f32.xlu2 %v1649_v15  ;;  %v1668_v55 = vsel %vm3544_vm4, %v3520_v45, 0.0  ;;  %v1670_v15 = vsel %vm3544_vm4, %v3454_v26, 0.0 }
 0x1ee   : >> { %1704 = vadd.xlane.f32.xlu1 %v1648_v59  ;;  %v1669_v59 = vsel %vm3544_vm4, %v3515_v57, 0.0 }
 0x1f5   : >> { %1708 = vadd.xlane.f32.xlu0 %v1650_v16  ;;  %1712 = vadd.xlane.f32.xlu2 %v1652_v42  ;;  %v1671_v16 = vsel %vm3544_vm4, %v3526_v47, 0.0  ;;  %v1792_v42 = vstv %s2438_s1  ;;  %s3944_s1 = smov %s3539_s7 }
 0x1f6   : >> { %1710 = vadd.xlane.f32.xlu1 %v1651_v4  ;;  %vm3670_vm5 = vcmp.eq.s32.totalorder %v3488_v1, %v1792_v42  ;;  %v1760_v42 = vld [vmem:[%s2555_s17 + $0x40] sm:$0xff] }
 0x1fd   : >> { %1714 = vadd.xlane.f32.xlu0 %v1653_v56  ;;  %1718 = vadd.xlane.f32.xlu2 %v1655_v14  ;;  %v1752_v56 = vld [vmem:[%s2555_s17] sm:$0xff] }
 0x1fe   : >> { %1716 = vadd.xlane.f32.xlu1 %v1654_v27  ;;  %v1756_v14 = vld [vmem:[%s2555_s17 + $0x20] sm:$0xff] }
 0x205   : >> { %1720 = vadd.xlane.f32.xlu0 %v1656_v21  ;;  %1724 = vadd.xlane.f32.xlu2 %v1658_v40 }
 0x206   : >> { %1722 = vadd.xlane.f32.xlu1 %v1657_v35 }
 0x20d   : >> { %1726 = vadd.xlane.f32.xlu0 %v1659_v12  ;;  %1730 = vadd.xlane.f32.xlu2 %v1661_v31 }
 0x20e   : >> { %1728 = vadd.xlane.f32.xlu1 %v1660_v20 }
 0x215   : >> { %1732 = vadd.xlane.f32.xlu0 %v1662_v60  ;;  %1736 = vadd.xlane.f32.xlu2 %v1664_v30  ;;  %v1753_v60 = vld [vmem:[%s2555_s17 + $0x8] sm:$0xff] }
 0x216   : >> { %1734 = vadd.xlane.f32.xlu1 %v1663_v46  ;;  %v1755_v46 = vld [vmem:[%s2555_s17 + $0x18] sm:$0xff] }
 0x21d   : >> { %1738 = vadd.xlane.f32.xlu0 %v1665_v28  ;;  %1742 = vadd.xlane.f32.xlu2 %v1667_v51 }
 0x21e   : >> { %1740 = vadd.xlane.f32.xlu1 %v1666_v36 }
 0x225   : >> { %1744 = vadd.xlane.f32.xlu0 %v1668_v55  ;;  %1748 = vadd.xlane.f32.xlu2 %v1670_v15 }
 0x226   : >> { %1746 = vadd.xlane.f32.xlu1 %v1669_v59 }
 0x22d   : >> { %1750 = vadd.xlane.f32.xlu0 %v1671_v16  ;;  %v1758_v16 = vld [vmem:[%s2555_s17 + $0x30] sm:$0xff] }
 0x238   : >> { %v1673_v27 = vpop.xlane.xlu0 %1672  ;;  %v1681_v21 = vpop.xlane.xlu2 %1680 }
 0x239   : >> { %v1796_v50 = vsel %vm3670_vm5, %v1673_v27, 0.0  ;;  %v1800_v40 = vsel %vm3670_vm5, %v1681_v21, 0.0  ;;  %v1677_v48 = vpop.xlane.xlu1 %1676  ;;  %v1759_v27 = vld [vmem:[%s2555_s17 + $0x38] sm:$0xff] }
 0x23a   : >> { %v1836_v35 = vadd.f32 %v1796_v50, %v1752_v56  ;;  %v1840_v12 = vadd.f32 %v1800_v40, %v1756_v14  ;;  %v1798_v31 = vsel %vm3670_vm5, %v1677_v48, 0.0 }
 0x23b   : >> { %v1838_v20 = vadd.f32 %v1798_v31, %v1754_v37  ;;  %v1761_v31 = vld [vmem:[%s2555_s17 + $0x48] sm:$0xff] }
 0x23c   : >> { %1877 = vst.msk [vmem:[%s2555_s17] sm:$0xff] %vm1876_vm6, %v1836_v35 }
 0x23d   : >> { %1881 = vst.msk [vmem:[%s2555_s17 + $0x20] sm:$0xff] %vm1876_vm6, %v1840_v12 }
 0x23e   : >> { %1879 = vst.msk [vmem:[%s2555_s17 + $0x10] sm:$0xff] %vm1876_vm6, %v1838_v20  ;;  %v1763_v20 = vld [vmem:[%s2555_s17 + $0x58] sm:$0xff] }
 0x240   : >> { %v1675_v30 = vpop.xlane.xlu0 %1674  ;;  %v1683_v61 = vpop.xlane.xlu2 %1682 }
 0x241   : >> { %v1797_v28 = vsel %vm3670_vm5, %v1675_v30, 0.0  ;;  %v1801_v52 = vsel %vm3670_vm5, %v1683_v61, 0.0  ;;  %v1679_v51 = vpop.xlane.xlu1 %1678  ;;  %v1762_v30 = vld [vmem:[%s2555_s17 + $0x50] sm:$0xff] }
 0x242   : >> { %v1837_v36 = vadd.f32 %v1797_v28, %v1753_v60  ;;  %v1841_v55 = vadd.f32 %v1801_v52, %v1757_v33  ;;  %v1799_v15 = vsel %vm3670_vm5, %v1679_v51, 0.0 }
 0x243   : >> { %v1839_v59 = vadd.f32 %v1799_v15, %v1755_v46  ;;  %v1764_v15 = vld [vmem:[%s2555_s17 + $0x60] sm:$0xff] }
 0x244   : >> { %1878 = vst.msk [vmem:[%s2555_s17 + $0x8] sm:$0xff] %vm1876_vm6, %v1837_v36 }
 0x245   : >> { %1882 = vst.msk [vmem:[%s2555_s17 + $0x28] sm:$0xff] %vm1876_vm6, %v1841_v55 }
 0x246   : >> { %1880 = vst.msk [vmem:[%s2555_s17 + $0x18] sm:$0xff] %vm1876_vm6, %v1839_v59  ;;  %v1766_v59 = vld [vmem:[%s2555_s17 + $0x70] sm:$0xff] }
 0x248   : >> { %v1685_v56 = vpop.xlane.xlu0 %1684  ;;  %v1689_v14 = vpop.xlane.xlu2 %1688 }
 0x249   : >> { %v1802_v21 = vsel %vm3670_vm5, %v1685_v56, 0.0  ;;  %v1804_v37 = vsel %vm3670_vm5, %v1689_v14, 0.0  ;;  %v1687_v50 = vpop.xlane.xlu1 %1686  ;;  %v1765_v56 = vld [vmem:[%s2555_s17 + $0x68] sm:$0xff] }
 0x24a   : >> { %v1842_v40 = vadd.f32 %v1802_v21, %v1758_v16  ;;  %v1844_v48 = vadd.f32 %v1804_v37, %v1760_v42  ;;  %v1803_v35 = vsel %vm3670_vm5, %v1687_v50, 0.0 }
 0x24b   : >> { %v1843_v12 = vadd.f32 %v1803_v35, %v1759_v27  ;;  %v1767_v35 = vld [vmem:[%s2555_s17 + $0x78] sm:$0xff] }
 0x24c   : >> { %1883 = vst.msk [vmem:[%s2555_s17 + $0x30] sm:$0xff] %vm1876_vm6, %v1842_v40 }
 0x24d   : >> { %1885 = vst.msk [vmem:[%s2555_s17 + $0x40] sm:$0xff] %vm1876_vm6, %v1844_v48 }
 0x24e   : >> { %1884 = vst.msk [vmem:[%s2555_s17 + $0x38] sm:$0xff] %vm1876_vm6, %v1843_v12  ;;  %v1769_v12 = vld [vmem:[%s2555_s17 + $0x88] sm:$0xff] }
 0x250   : >> { %v1691_v60 = vpop.xlane.xlu0 %1690  ;;  %v1695_v33 = vpop.xlane.xlu2 %1694 }
 0x251   : >> { %v1805_v61 = vsel %vm3670_vm5, %v1691_v60, 0.0  ;;  %v1807_v46 = vsel %vm3670_vm5, %v1695_v33, 0.0  ;;  %v1693_v28 = vpop.xlane.xlu1 %1692  ;;  %v1768_v60 = vld [vmem:[%s2555_s17 + $0x80] sm:$0xff] }
 0x252   : >> { %v1845_v52 = vadd.f32 %v1805_v61, %v1761_v31  ;;  %v1847_v51 = vadd.f32 %v1807_v46, %v1763_v20  ;;  %v1806_v36 = vsel %vm3670_vm5, %v1693_v28, 0.0 }
 0x253   : >> { %v1846_v55 = vadd.f32 %v1806_v36, %v1762_v30  ;;  %v1770_v36 = vld [vmem:[%s2555_s17 + $0x90] sm:$0xff] }
 0x254   : >> { %1886 = vst.msk [vmem:[%s2555_s17 + $0x48] sm:$0xff] %vm1876_vm6, %v1845_v52 }
 0x255   : >> { %1888 = vst.msk [vmem:[%s2555_s17 + $0x58] sm:$0xff] %vm1876_vm6, %v1847_v51 }
 0x256   : >> { %1887 = vst.msk [vmem:[%s2555_s17 + $0x50] sm:$0xff] %vm1876_vm6, %v1846_v55  ;;  %v1772_v55 = vld [vmem:[%s2555_s17 + $0xa0] sm:$0xff] }
 0x258   : >> { %v1697_v16 = vpop.xlane.xlu0 %1696  ;;  %v1701_v42 = vpop.xlane.xlu2 %1700 }
 0x259   : >> { %v1808_v14 = vsel %vm3670_vm5, %v1697_v16, 0.0  ;;  %v1810_v27 = vsel %vm3670_vm5, %v1701_v42, 0.0  ;;  %v1699_v21 = vpop.xlane.xlu1 %1698  ;;  %v1771_v16 = vld [vmem:[%s2555_s17 + $0x98] sm:$0xff] }
 0x25a   : >> { %v1848_v37 = vadd.f32 %v1808_v14, %v1764_v15  ;;  %v1850_v50 = vadd.f32 %v1810_v27, %v1766_v59  ;;  %v1809_v40 = vsel %vm3670_vm5, %v1699_v21, 0.0 }
 0x25b   : >> { %v1849_v48 = vadd.f32 %v1809_v40, %v1765_v56  ;;  %v1773_v40 = vld [vmem:[%s2555_s17 + $0xa8] sm:$0xff] }
 0x25c   : >> { %1889 = vst.msk [vmem:[%s2555_s17 + $0x60] sm:$0xff] %vm1876_vm6, %v1848_v37 }
 0x25d   : >> { %1891 = vst.msk [vmem:[%s2555_s17 + $0x70] sm:$0xff] %vm1876_vm6, %v1850_v50 }
 0x25e   : >> { %1890 = vst.msk [vmem:[%s2555_s17 + $0x68] sm:$0xff] %vm1876_vm6, %v1849_v48  ;;  %v1775_v48 = vld [vmem:[%s2555_s17 + $0xb8] sm:$0xff] }
 0x260   : >> { %v1703_v31 = vpop.xlane.xlu0 %1702  ;;  %v1707_v20 = vpop.xlane.xlu2 %1706 }
 0x261   : >> { %v1811_v33 = vsel %vm3670_vm5, %v1703_v31, 0.0  ;;  %v1813_v30 = vsel %vm3670_vm5, %v1707_v20, 0.0  ;;  %v1705_v61 = vpop.xlane.xlu1 %1704  ;;  %v1774_v31 = vld [vmem:[%s2555_s17 + $0xb0] sm:$0xff] }
 0x262   : >> { %v1851_v46 = vadd.f32 %v1811_v33, %v1767_v35  ;;  %v1853_v28 = vadd.f32 %v1813_v30, %v1769_v12  ;;  %v1812_v52 = vsel %vm3670_vm5, %v1705_v61, 0.0 }
 0x263   : >> { %v1852_v51 = vadd.f32 %v1812_v52, %v1768_v60  ;;  %v1776_v52 = vld [vmem:[%s2555_s17 + $0xc0] sm:$0xff] }
 0x264   : >> { %1892 = vst.msk [vmem:[%s2555_s17 + $0x78] sm:$0xff] %vm1876_vm6, %v1851_v46 }
 0x265   : >> { %1894 = vst.msk [vmem:[%s2555_s17 + $0x88] sm:$0xff] %vm1876_vm6, %v1853_v28 }
 0x266   : >> { %1893 = vst.msk [vmem:[%s2555_s17 + $0x80] sm:$0xff] %vm1876_vm6, %v1852_v51  ;;  %v1778_v51 = vld [vmem:[%s2555_s17 + $0xd0] sm:$0xff] }
 0x268   : >> { %v1709_v15 = vpop.xlane.xlu0 %1708  ;;  %v1713_v59 = vpop.xlane.xlu2 %1712 }
 0x269   : >> { %v1814_v42 = vsel %vm3670_vm5, %v1709_v15, 0.0  ;;  %v1816_v56 = vsel %vm3670_vm5, %v1713_v59, 0.0  ;;  %v1711_v14 = vpop.xlane.xlu1 %1710  ;;  %v1777_v15 = vld [vmem:[%s2555_s17 + $0xc8] sm:$0xff] }
 0x26a   : >> { %v1854_v27 = vadd.f32 %v1814_v42, %v1770_v36  ;;  %v1856_v21 = vadd.f32 %v1816_v56, %v1772_v55  ;;  %v1815_v37 = vsel %vm3670_vm5, %v1711_v14, 0.0 }
 0x26b   : >> { %v1855_v50 = vadd.f32 %v1815_v37, %v1771_v16  ;;  %v1779_v37 = vld [vmem:[%s2555_s17 + $0xd8] sm:$0xff] }
 0x26c   : >> { %1895 = vst.msk [vmem:[%s2555_s17 + $0x90] sm:$0xff] %vm1876_vm6, %v1854_v27 }
 0x26d   : >> { %1897 = vst.msk [vmem:[%s2555_s17 + $0xa0] sm:$0xff] %vm1876_vm6, %v1856_v21 }
 0x26e   : >> { %1896 = vst.msk [vmem:[%s2555_s17 + $0x98] sm:$0xff] %vm1876_vm6, %v1855_v50  ;;  %v1781_v50 = vld [vmem:[%s2555_s17 + $0xe8] sm:$0xff] }
 0x270   : >> { %v1715_v35 = vpop.xlane.xlu0 %1714  ;;  %v1719_v12 = vpop.xlane.xlu2 %1718 }
 0x271   : >> { %v1817_v20 = vsel %vm3670_vm5, %v1715_v35, 0.0  ;;  %v1819_v60 = vsel %vm3670_vm5, %v1719_v12, 0.0  ;;  %v1717_v33 = vpop.xlane.xlu1 %1716  ;;  %v1780_v35 = vld [vmem:[%s2555_s17 + $0xe0] sm:$0xff] }
 0x272   : >> { %v1857_v30 = vadd.f32 %v1817_v20, %v1773_v40  ;;  %v1859_v61 = vadd.f32 %v1819_v60, %v1775_v48  ;;  %v1818_v46 = vsel %vm3670_vm5, %v1717_v33, 0.0 }
 0x273   : >> { %v1858_v28 = vadd.f32 %v1818_v46, %v1774_v31  ;;  %v1782_v46 = vld [vmem:[%s2555_s17 + $0xf0] sm:$0xff] }
 0x274   : >> { %1898 = vst.msk [vmem:[%s2555_s17 + $0xa8] sm:$0xff] %vm1876_vm6, %v1857_v30 }
 0x275   : >> { %1900 = vst.msk [vmem:[%s2555_s17 + $0xb8] sm:$0xff] %vm1876_vm6, %v1859_v61 }
 0x276   : >> { %1899 = vst.msk [vmem:[%s2555_s17 + $0xb0] sm:$0xff] %vm1876_vm6, %v1858_v28  ;;  %v1784_v28 = vld [vmem:[%s2555_s17 + $0x100] sm:$0xff] }
 0x278   : >> { %v1721_v36 = vpop.xlane.xlu0 %1720  ;;  %v1725_v55 = vpop.xlane.xlu2 %1724 }
 0x279   : >> { %v1820_v59 = vsel %vm3670_vm5, %v1721_v36, 0.0  ;;  %v1822_v16 = vsel %vm3670_vm5, %v1725_v55, 0.0  ;;  %v1723_v42 = vpop.xlane.xlu1 %1722  ;;  %v1783_v36 = vld [vmem:[%s2555_s17 + $0xf8] sm:$0xff] }
 0x27a   : >> { %v1860_v56 = vadd.f32 %v1820_v59, %v1776_v52  ;;  %v1862_v14 = vadd.f32 %v1822_v16, %v1778_v51  ;;  %v1821_v27 = vsel %vm3670_vm5, %v1723_v42, 0.0 }
 0x27b   : >> { %v1861_v21 = vadd.f32 %v1821_v27, %v1777_v15  ;;  %v1785_v27 = vld [vmem:[%s2555_s17 + $0x108] sm:$0xff] }
 0x27c   : >> { %1901 = vst.msk [vmem:[%s2555_s17 + $0xc0] sm:$0xff] %vm1876_vm6, %v1860_v56 }
 0x27d   : >> { %1903 = vst.msk [vmem:[%s2555_s17 + $0xd0] sm:$0xff] %vm1876_vm6, %v1862_v14 }
 0x27e   : >> { %1902 = vst.msk [vmem:[%s2555_s17 + $0xc8] sm:$0xff] %vm1876_vm6, %v1861_v21  ;;  %v1787_v21 = vld [vmem:[%s2555_s17 + $0x118] sm:$0xff] }
 0x280   : >> { %v1727_v40 = vpop.xlane.xlu0 %1726  ;;  %v1731_v48 = vpop.xlane.xlu2 %1730 }
 0x281   : >> { %v1823_v12 = vsel %vm3670_vm5, %v1727_v40, 0.0  ;;  %v1825_v31 = vsel %vm3670_vm5, %v1731_v48, 0.0  ;;  %v1729_v20 = vpop.xlane.xlu1 %1728  ;;  %v1786_v40 = vld [vmem:[%s2555_s17 + $0x110] sm:$0xff] }
 0x282   : >> { %v1863_v60 = vadd.f32 %v1823_v12, %v1779_v37  ;;  %v1865_v33 = vadd.f32 %v1825_v31, %v1781_v50  ;;  %v1824_v30 = vsel %vm3670_vm5, %v1729_v20, 0.0 }
 0x283   : >> { %v1864_v61 = vadd.f32 %v1824_v30, %v1780_v35  ;;  %v1788_v30 = vld [vmem:[%s2555_s17 + $0x120] sm:$0xff] }
 0x284   : >> { %1904 = vst.msk [vmem:[%s2555_s17 + $0xd8] sm:$0xff] %vm1876_vm6, %v1863_v60 }
 0x285   : >> { %1906 = vst.msk [vmem:[%s2555_s17 + $0xe8] sm:$0xff] %vm1876_vm6, %v1865_v33 }
 0x286   : >> { %1905 = vst.msk [vmem:[%s2555_s17 + $0xe0] sm:$0xff] %vm1876_vm6, %v1864_v61  ;;  %v1790_v61 = vld [vmem:[%s2555_s17 + $0x130] sm:$0xff] }
 0x288   : >> { %v1733_v52 = vpop.xlane.xlu0 %1732  ;;  %v1737_v51 = vpop.xlane.xlu2 %1736 }
 0x289   : >> { %v1826_v55 = vsel %vm3670_vm5, %v1733_v52, 0.0  ;;  %v1828_v15 = vsel %vm3670_vm5, %v1737_v51, 0.0  ;;  %v1735_v59 = vpop.xlane.xlu1 %1734  ;;  %v1789_v52 = vld [vmem:[%s2555_s17 + $0x128] sm:$0xff] }
 0x28a   : >> { %v1866_v16 = vadd.f32 %v1826_v55, %v1782_v46  ;;  %v1868_v42 = vadd.f32 %v1828_v15, %v1784_v28  ;;  %v1827_v56 = vsel %vm3670_vm5, %v1735_v59, 0.0 }
 0x28b   : >> { %v1867_v14 = vadd.f32 %v1827_v56, %v1783_v36  ;;  %v1791_v56 = vld [vmem:[%s2555_s17 + $0x138] sm:$0xff] }
 0x28c   : >> { %1907 = vst.msk [vmem:[%s2555_s17 + $0xf0] sm:$0xff] %vm1876_vm6, %v1866_v16 }
 0x28d   : >> { %1909 = vst.msk [vmem:[%s2555_s17 + $0x100] sm:$0xff] %vm1876_vm6, %v1868_v42 }
 0x28e   : >> { %1908 = vst.msk [vmem:[%s2555_s17 + $0xf8] sm:$0xff] %vm1876_vm6, %v1867_v14 }
 0x290   : >> { %v1739_v37 = vpop.xlane.xlu0 %1738  ;;  %v1743_v50 = vpop.xlane.xlu2 %1742 }
 0x291   : >> { %v1829_v48 = vsel %vm3670_vm5, %v1739_v37, 0.0  ;;  %v1831_v35 = vsel %vm3670_vm5, %v1743_v50, 0.0  ;;  %v1741_v12 = vpop.xlane.xlu1 %1740 }
 0x292   : >> { %v1869_v31 = vadd.f32 %v1829_v48, %v1785_v27  ;;  %v1871_v20 = vadd.f32 %v1831_v35, %v1787_v21  ;;  %v1830_v60 = vsel %vm3670_vm5, %v1741_v12, 0.0 }
 0x293   : >> { %v1870_v33 = vadd.f32 %v1830_v60, %v1786_v40 }
 0x294   : >> { %1910 = vst.msk [vmem:[%s2555_s17 + $0x108] sm:$0xff] %vm1876_vm6, %v1869_v31 }
 0x295   : >> { %1912 = vst.msk [vmem:[%s2555_s17 + $0x118] sm:$0xff] %vm1876_vm6, %v1871_v20 }
 0x296   : >> { %1911 = vst.msk [vmem:[%s2555_s17 + $0x110] sm:$0xff] %vm1876_vm6, %v1870_v33 }
 0x298   : >> { %v1745_v46 = vpop.xlane.xlu0 %1744  ;;  %v1749_v28 = vpop.xlane.xlu2 %1748 }
 0x299   : >> { %v1832_v51 = vsel %vm3670_vm5, %v1745_v46, 0.0  ;;  %v1834_v36 = vsel %vm3670_vm5, %v1749_v28, 0.0  ;;  %v1747_v55 = vpop.xlane.xlu1 %1746 }
 0x29a   : >> { %v1872_v15 = vadd.f32 %v1832_v51, %v1788_v30  ;;  %v1874_v59 = vadd.f32 %v1834_v36, %v1790_v61  ;;  %v1833_v16 = vsel %vm3670_vm5, %v1747_v55, 0.0 }
 0x29b   : >> { %v1873_v42 = vadd.f32 %v1833_v16, %v1789_v52 }
 0x29c   : >> { %1913 = vst.msk [vmem:[%s2555_s17 + $0x120] sm:$0xff] %vm1876_vm6, %v1872_v15 }
 0x29d   : >> { %1915 = vst.msk [vmem:[%s2555_s17 + $0x130] sm:$0xff] %vm1876_vm6, %v1874_v59 }
 0x29e   : >> { %1914 = vst.msk [vmem:[%s2555_s17 + $0x128] sm:$0xff] %vm1876_vm6, %v1873_v42 }
 0x2a0   : >> { %v1751_v14 = vpop.xlane.xlu0 %1750  ;;  %1621 = sbr.rel (!%p1618_p13) target bundleno = 442 (0x1ba), region = 116 }
 0x2a1   : >> { %v1835_v27 = vsel %vm3670_vm5, %v1751_v14, 0.0 }
 0x2a2   : >> { %v1875_v21 = vadd.f32 %v1835_v27, %v1791_v56 }
 0x2a4   : >> { %1916 = vst.msk [vmem:[%s2555_s17 + $0x138] sm:$0xff] %vm1876_vm6, %v1875_v21 }
 0x2a5 PF: > { %s34_s13 = sadd.s32 1, %s2434_s13   ;;  %s3945_s0 = smov %s2414_s9 }
 0x2a6   : > { %p31_p0 = scmp.ge.s32.totalorder %s34_s13, 6   ;;  %s3946_s9 = smov %s2540_s21 }
 0x2a7   : > { %s3947_s1 = smov %s2426_s11  ;;  %s3948_s10 = smov %s2430_s12 }
 0x2a8   : > { %s3949_s11 = smov %s3952_s2  ;;  %s3950_s12 = smov %s3956_s14 }
 0x2a9   :  { %33 = sbr.rel (!%p31_p0) target bundleno = 13 (0xd), region = 127 }

</bundles_post_ra>
